<compile_context>
chip_gen: v7x
topology: tpu7x:2x2x1
jax: 0.10.0
libtpu: 0.0.40
codegen_flags: <defaults>
</compile_context>

<pallas_src>
import jax
import jax.numpy as jnp
import numpy as np
from jax import lax
from jax.experimental import pallas as pl
from jax.experimental.pallas import tpu as pltpu

CHANNELS = 4   # channels
KSIZE = 6      # kernel_size
STRIDE = 2     # stride
PAD = 2        # padding
KP = KSIZE // STRIDE  # taps per axis after the stride-1 rewrite (= 3)

# The stride-1 3x3 rewrite below (tap offsets in {-1, 0, +1}) assumes the
# DBPN 2x configuration of this block.
assert (KSIZE, STRIDE, PAD) == (6, 2, 2)

TAPS = tuple((a - 1, b - 1) for a in range(KP) for b in range(KP))


# ----------------------------------------------------------------------------
# Wrapper-side weight preparation (pure data movement, done once)
# ----------------------------------------------------------------------------
def convT_phase_weights(wt, S):
    """ConvTranspose2d weight (Cin, Cout, K, K) -> per-tap matrices
    (K//S, K//S, S*S*Cout, Cin) for the equivalent stride-1 conv whose S*S
    output phases are packed into channels as (ph, pw, co)."""
    Cin, Cout, K, _ = wt.shape
    Kp = K // S
    w = wt.reshape(Cin, Cout, Kp, S, Kp, S)      # [ci, co, qh, ph, qw, pw]
    w = jnp.flip(w, axis=(2, 4))                 # tap a uses kh = ph + S*(Kp-1-a)
    w = jnp.transpose(w, (2, 4, 3, 5, 1, 0))     # [a, b, ph, pw, co, ci]
    return w.reshape(Kp, Kp, S * S * Cout, Cin)


def conv_s2d_weights(w, S):
    """Strided Conv2d weight (Cout, Cin, K, K) -> per-tap matrices
    (K//S, K//S, Cout, S*S*Cin) for the equivalent stride-1 conv on the
    space-to-depth input (input channels packed as (ph, pw, ci))."""
    Cout, Cin, K, _ = w.shape
    Kp = K // S
    ww = w.reshape(Cout, Cin, Kp, S, Kp, S)      # [co, ci, a, ph, b, pw]
    ww = jnp.transpose(ww, (2, 4, 0, 3, 5, 1))   # [a, b, co, ph, pw, ci]
    return ww.reshape(Kp, Kp, Cout, S * S * Cin)


def flatten_taps(wk):
    """(Kp, Kp, Cout, Cin) per-tap matrices -> single (Cout, Kp*Kp*Cin) matrix
    whose contraction order matches the im2col row stacking (tap-major)."""
    Kp, _, Cout, Cin = wk.shape
    return jnp.transpose(wk, (2, 0, 1, 3)).reshape(Cout, Kp * Kp * Cin)


# ----------------------------------------------------------------------------
# Fused UpProjectionBlock forward
# ----------------------------------------------------------------------------
def up_projection_block(x_nchw, params):
    (wt1, b1, a1), (w2, b2, a2), (wt3, b3, a3) = params
    N, C, H, W = x_nchw.shape
    S = STRIDE
    C16 = S * S * C                      # phase-packed channel count (= 16)
    Hp, Wp = H + 2, W + 2                # 1-pixel halo per image
    Mp = N * Hp * Wp                     # padded-layout pixel count
    MC = ((Mp + 127) // 128) * 128       # lane-aligned compute width
    OFF = 128                            # left margin (>= Wp + 1, lane aligned)
    MARGIN = 128                         # right margin (>= Wp + 1)
    MP = OFF + MC + MARGIN
    assert OFF >= Wp + 1 and MARGIN >= Wp + 1

    K9C = KP * KP * C                    # 36
    K9C16 = KP * KP * C16                # 144
    PB = C16 + C                         # pbuf rows: h0 (16) + (l0 - x) (4)

    # ---- layout glue (cheap XLA ops, done once) -----------------------------
    x_t = x_nchw.astype(jnp.float32).transpose(1, 0, 2, 3)          # (C,N,H,W)
    x_p = jnp.pad(x_t, ((0, 0), (0, 0), (1, 1), (1, 1)))            # halo zeros
    x_flat = x_p.reshape(C, Mp)
    x_buf = jnp.zeros((C, MP), jnp.float32).at[:, OFF:OFF + Mp].set(x_flat)

    w1_flat = flatten_taps(convT_phase_weights(wt1.astype(jnp.float32), S))  # (16, 36)
    w2_flat = flatten_taps(conv_s2d_weights(w2.astype(jnp.float32), S))      # (4, 144)
    w3_flat = flatten_taps(convT_phase_weights(wt3.astype(jnp.float32), S))  # (16, 36)
    b1_k = jnp.tile(b1, S * S).reshape(C16, 1).astype(jnp.float32)
    b2_k = b2.reshape(C, 1).astype(jnp.float32)
    b3_k = jnp.tile(b3, S * S).reshape(C16, 1).astype(jnp.float32)
    alphas = jnp.concatenate([a1, a2, a3]).astype(jnp.float32)   # PReLU slopes

    # Single (1, MC) valid-lane mask: 1 on real pixels, 0 on halo / alignment
    # lanes.  Applied once per stage (re-zeroes the stored halo, which is the
    # zero padding of the next conv).
    lane = jnp.arange(MC)
    p = lane % (Hp * Wp)
    r = p // Wp
    c = p % Wp
    ok = (lane < Mp) & (r >= 1) & (r <= H) & (c >= 1) & (c <= W)
    vmask = ok.astype(jnp.float32)[None, :]

    # ---- fused kernel --------------------------------------------------------
    def kernel(alpha_ref, xp_ref, w1_ref, w2_ref, w3_ref,
               b1_ref, b2_ref, b3_ref, vm_ref,
               out_ref, pbuf, col_s, col_b):
        # Zero only the margins of pbuf: interior lanes are fully overwritten
        # by the h0 / (l0-x) stores below, and shifted reads never reach more
        # than Wp+1 lanes into the margins.
        pbuf[:, 0:OFF] = jnp.zeros((PB, OFF), jnp.float32)
        pbuf[:, OFF + MC:MP] = jnp.zeros((PB, MARGIN), jnp.float32)

        vm = vm_ref[...]                                       # (1, MC)

        def im2col(read, col_ref, cin):
            # Stack the 9 shifted (cin, MC) slabs tap-major into col_ref.
            for t, (da, db) in enumerate(TAPS):
                s = OFF + da * Wp + db                          # static offset
                col_ref[t * cin:(t + 1) * cin, :] = read(s)

        # stage 1: h0 = PReLU(ConvTranspose2d(x))   (sub-pixel form, 1 matmul)
        im2col(lambda s: xp_ref[:, s:s + MC], col_s, C)
        h0 = jnp.dot(w1_ref[...], col_s[...],
                     preferred_element_type=jnp.float32) + b1_ref[...]
        h0 = jnp.where(h0 > 0, h0, alpha_ref[0] * h0) * vm
        pbuf[0:C16, OFF:OFF + MC] = h0                          # lane-dense store

        # stage 2: l0 = PReLU(Conv2d(h0, stride 2)) (space-to-depth, 1 matmul)
        im2col(lambda s: pbuf[0:C16, s:s + MC], col_b, C16)
        l0 = jnp.dot(w2_ref[...], col_b[...],
                     preferred_element_type=jnp.float32) + b2_ref[...]
        l0 = jnp.where(l0 > 0, l0, alpha_ref[1] * l0) * vm
        d = l0 - xp_ref[:, OFF:OFF + MC]                        # residual l0 - x
        pbuf[C16:PB, OFF:OFF + MC] = d

        # stage 3: h1 = PReLU(ConvTranspose2d(l0 - x))
        im2col(lambda s: pbuf[C16:PB, s:s + MC], col_s, C)
        h1 = jnp.dot(w3_ref[...], col_s[...],
                     preferred_element_type=jnp.float32) + b3_ref[...]
        h1 = jnp.where(h1 > 0, h1, alpha_ref[2] * h1)

        # residual h1 + h0 (h0 re-read from VMEM; halo lanes discarded later)
        out_ref[...] = (h1 + pbuf[0:C16, OFF:OFF + MC]).astype(out_ref.dtype)

    out_t = pl.pallas_call(
        kernel,
        out_shape=jax.ShapeDtypeStruct((C16, MC), jnp.float32),
        grid=(1,),   # whole batch in one step (batch folded into the lane dim)
        in_specs=[
            pl.BlockSpec(memory_space=pltpu.MemorySpace.SMEM),      # PReLU alphas
            pl.BlockSpec((C, MP), lambda i: (0, 0)),                # padded x
            pl.BlockSpec((C16, K9C), lambda i: (0, 0)),             # w1 (16, 36)
            pl.BlockSpec((C, K9C16), lambda i: (0, 0)),             # w2 (4, 144)
            pl.BlockSpec((C16, K9C), lambda i: (0, 0)),             # w3 (16, 36)
            pl.BlockSpec((C16, 1), lambda i: (0, 0)),               # b1
            pl.BlockSpec((C, 1), lambda i: (0, 0)),                 # b2
            pl.BlockSpec((C16, 1), lambda i: (0, 0)),               # b3
            pl.BlockSpec((1, MC), lambda i: (0, 0)),                # valid mask
        ],
        out_specs=pl.BlockSpec((C16, MC), lambda i: (0, 0)),
        scratch_shapes=[
            pltpu.VMEM((PB, MP), jnp.float32),      # h0 + (l0-x), zero-padded
            pltpu.VMEM((K9C, MC), jnp.float32),     # im2col for stages 1 / 3
            pltpu.VMEM((K9C16, MC), jnp.float32),   # im2col for stage 2
        ],
        compiler_params=pltpu.CompilerParams(
            dimension_semantics=("arbitrary",)),
    )(alphas, x_buf, w1_flat, w2_flat, w3_flat, b1_k, b2_k, b3_k, vmask)

    # depth-to-space + strip the spatial halo:
    # rows (ph, pw, co), cols (n, ip, jp)  ->  NCHW (N, C, 2H, 2W)
    out_v = out_t[:, :Mp].reshape(S, S, C, N, Hp, Wp)[:, :, :, :, 1:H + 1, 1:W + 1]
    return out_v.transpose(3, 2, 4, 0, 5, 1).reshape(N, C, S * H, S * W)


# ----------------------------------------------------------------------------
# Deterministic parameter init (synthetic; mirrors module __init__ shapes)
# ----------------------------------------------------------------------------
def init_params(key, C, K):
    ks = jax.random.split(key, 6)
    sc = 0.05
    wt1 = sc * jax.random.normal(ks[0], (C, C, K, K), jnp.float32)  # ConvT (Cin,Cout,K,K)
    b1 = sc * jax.random.normal(ks[1], (C,), jnp.float32)
    w2 = sc * jax.random.normal(ks[2], (C, C, K, K), jnp.float32)   # Conv  (Cout,Cin,K,K)
    b2 = sc * jax.random.normal(ks[3], (C,), jnp.float32)
    wt3 = sc * jax.random.normal(ks[4], (C, C, K, K), jnp.float32)
    b3 = sc * jax.random.normal(ks[5], (C,), jnp.float32)
    alpha = jnp.full((1,), 0.25, jnp.float32)  # nn.PReLU() default init
    return (wt1, b1, alpha), (w2, b2, alpha), (wt3, b3, alpha)


# ----------------------------------------------------------------------------
# Pure-JAX reference (XLA convs) for correctness check
# ----------------------------------------------------------------------------
def dilate_and_pad(x, s, edge):
    cfg = [(0, 0, 0), (edge, edge, s - 1), (edge, edge, s - 1), (0, 0, 0)]
    return lax.pad(x, jnp.float32(0), cfg)


def _ref_conv(x_pad, w_hwio, b, stride):
    y = lax.conv_general_dilated(
        x_pad, w_hwio, (stride, stride), "VALID",
        dimension_numbers=("NHWC", "HWIO", "NHWC"),
    )
    return y + b


def _prelu(x, a):
    return jnp.where(x > 0, x, a * x)


def ref_forward(x_nchw, params):
    x = jnp.transpose(x_nchw, (0, 2, 3, 1)).astype(jnp.float32)
    (wt1, b1, a1), (w2, b2, a2), (wt3, b3, a3) = params
    K, S, P = KSIZE, STRIDE, PAD
    w1_eq = jnp.flip(wt1, (2, 3)).transpose(2, 3, 0, 1)
    w3_eq = jnp.flip(wt3, (2, 3)).transpose(2, 3, 0, 1)
    w2_eq = w2.transpose(2, 3, 1, 0)
    h0 = _prelu(_ref_conv(dilate_and_pad(x, S, K - 1 - P), w1_eq, b1, 1), a1)
    l0 = _prelu(
        _ref_conv(jnp.pad(h0, ((0, 0), (P, P), (P, P), (0, 0))), w2_eq, b2, S), a2
    )
    h1 = _prelu(_ref_conv(dilate_and_pad(l0 - x, S, K - 1 - P), w3_eq, b3, 1), a3)
    return jnp.transpose(h1 + h0, (0, 3, 1, 2))


if __name__ == "__main__":
    key = jax.random.PRNGKey(0)
    kparam, kx = jax.random.split(key)
    params = init_params(kparam, CHANNELS, KSIZE)
    x = jax.random.normal(kx, (2, CHANNELS, 16, 16), jnp.float32)  # NCHW

    out = jax.block_until_ready(up_projection_block(x, params))
    ref = jax.block_until_ready(ref_forward(x, params))

    assert out.shape == (2, CHANNELS, 32, 32), out.shape
    np.testing.assert_allclose(np.asarray(out), np.asarray(ref), rtol=1e-4, atol=1e-4)
    print("KERNEL_OK")
</pallas_src>

<mosaic_0001>
module attributes {stable_mosaic.version = 11 : i64} {
  func.func @kernel(%arg0: i32, %arg1: memref<3xf32, #tpu.memory_space<smem>>, %arg2: memref<4x1024xf32, #tpu.memory_space<vmem>>, %arg3: memref<16x36xf32, #tpu.memory_space<vmem>>, %arg4: memref<4x144xf32, #tpu.memory_space<vmem>>, %arg5: memref<16x36xf32, #tpu.memory_space<vmem>>, %arg6: memref<16x1xf32, #tpu.memory_space<vmem>>, %arg7: memref<4x1xf32, #tpu.memory_space<vmem>>, %arg8: memref<16x1xf32, #tpu.memory_space<vmem>>, %arg9: memref<1x768xf32, #tpu.memory_space<vmem>>, %arg10: memref<16x768xf32, #tpu.memory_space<vmem>>, %arg11: memref<20x1024xf32, #tpu.memory_space<vmem>>, %arg12: memref<36x768xf32, #tpu.memory_space<vmem>>, %arg13: memref<144x768xf32, #tpu.memory_space<vmem>>) attributes {dimension_semantics = [#tpu.dimension_semantics<arbitrary>], iteration_bounds = array<i64: 1>, scalar_prefetch = 0 : i64, scratch_operands = 3 : i64, tpu.core_type = #tpu.core_type<tc>, window_params = [{transform_indices = @transform_0, window_bounds = array<i64: 3>}, {pipeline_mode = #tpu.pipeline_mode<synchronous>, transform_indices = @transform_1, window_bounds = array<i64: 4, 1024>}, {pipeline_mode = #tpu.pipeline_mode<synchronous>, transform_indices = @transform_2, window_bounds = array<i64: 16, 36>}, {pipeline_mode = #tpu.pipeline_mode<synchronous>, transform_indices = @transform_3, window_bounds = array<i64: 4, 144>}, {pipeline_mode = #tpu.pipeline_mode<synchronous>, transform_indices = @transform_4, window_bounds = array<i64: 16, 36>}, {pipeline_mode = #tpu.pipeline_mode<synchronous>, transform_indices = @transform_5, window_bounds = array<i64: 16, 1>}, {pipeline_mode = #tpu.pipeline_mode<synchronous>, transform_indices = @transform_6, window_bounds = array<i64: 4, 1>}, {pipeline_mode = #tpu.pipeline_mode<synchronous>, transform_indices = @transform_7, window_bounds = array<i64: 16, 1>}, {pipeline_mode = #tpu.pipeline_mode<synchronous>, transform_indices = @transform_8, window_bounds = array<i64: 1, 768>}, {pipeline_mode = #tpu.pipeline_mode<synchronous>, transform_indices = @transform_9, window_bounds = array<i64: 16, 768>}]} {
    %cst = arith.constant 0.000000e+00 : f32
    %0 = vector.broadcast %cst : f32 to vector<20x128xf32>
    %c0 = arith.constant 0 : index
    %c0_0 = arith.constant 0 : index
    %1 = vector.load %arg11[%c0, %c0_0] : memref<20x1024xf32, #tpu.memory_space<vmem>>, vector<20x128xf32>
    tpu.vector_store %arg11[%c0, %c0_0], %0 {strides = array<i32>} : memref<20x1024xf32, #tpu.memory_space<vmem>>, vector<20x128xf32>,
    %cst_1 = arith.constant 0.000000e+00 : f32
    %2 = vector.broadcast %cst_1 : f32 to vector<20x128xf32>
    %c0_2 = arith.constant 0 : index
    %c896 = arith.constant 896 : index
    %3 = vector.load %arg11[%c0_2, %c896] : memref<20x1024xf32, #tpu.memory_space<vmem>>, vector<20x128xf32>
    tpu.vector_store %arg11[%c0_2, %c896], %2 {strides = array<i32>} : memref<20x1024xf32, #tpu.memory_space<vmem>>, vector<20x128xf32>,
    %c0_3 = arith.constant 0 : index
    %c0_4 = arith.constant 0 : index
    %4 = vector.load %arg9[%c0_3, %c0_4] : memref<1x768xf32, #tpu.memory_space<vmem>>, vector<1x768xf32>
    %c0_5 = arith.constant 0 : index
    %c109 = arith.constant 109 : index
    %5 = vector.load %arg2[%c0_5, %c109] : memref<4x1024xf32, #tpu.memory_space<vmem>>, vector<4x768xf32>
    %c0_6 = arith.constant 0 : index
    %c0_7 = arith.constant 0 : index
    %6 = vector.load %arg12[%c0_6, %c0_7] : memref<36x768xf32, #tpu.memory_space<vmem>>, vector<4x768xf32>
    tpu.vector_store %arg12[%c0_6, %c0_7], %5 {strides = array<i32>} : memref<36x768xf32, #tpu.memory_space<vmem>>, vector<4x768xf32>,
    %c0_8 = arith.constant 0 : index
    %c110 = arith.constant 110 : index
    %7 = vector.load %arg2[%c0_8, %c110] : memref<4x1024xf32, #tpu.memory_space<vmem>>, vector<4x768xf32>
    %c4 = arith.constant 4 : index
    %c0_9 = arith.constant 0 : index
    %8 = vector.load %arg12[%c4, %c0_9] : memref<36x768xf32, #tpu.memory_space<vmem>>, vector<4x768xf32>
    tpu.vector_store %arg12[%c4, %c0_9], %7 {strides = array<i32>} : memref<36x768xf32, #tpu.memory_space<vmem>>, vector<4x768xf32>,
    %c0_10 = arith.constant 0 : index
    %c111 = arith.constant 111 : index
    %9 = vector.load %arg2[%c0_10, %c111] : memref<4x1024xf32, #tpu.memory_space<vmem>>, vector<4x768xf32>
    %c8 = arith.constant 8 : index
    %c0_11 = arith.constant 0 : index
    %10 = vector.load %arg12[%c8, %c0_11] : memref<36x768xf32, #tpu.memory_space<vmem>>, vector<4x768xf32>
    tpu.vector_store %arg12[%c8, %c0_11], %9 {strides = array<i32>} : memref<36x768xf32, #tpu.memory_space<vmem>>, vector<4x768xf32>,
    %c0_12 = arith.constant 0 : index
    %c127 = arith.constant 127 : index
    %11 = vector.load %arg2[%c0_12, %c127] : memref<4x1024xf32, #tpu.memory_space<vmem>>, vector<4x768xf32>
    %c12 = arith.constant 12 : index
    %c0_13 = arith.constant 0 : index
    %12 = vector.load %arg12[%c12, %c0_13] : memref<36x768xf32, #tpu.memory_space<vmem>>, vector<4x768xf32>
    tpu.vector_store %arg12[%c12, %c0_13], %11 {strides = array<i32>} : memref<36x768xf32, #tpu.memory_space<vmem>>, vector<4x768xf32>,
    %c0_14 = arith.constant 0 : index
    %c128 = arith.constant 128 : index
    %13 = vector.load %arg2[%c0_14, %c128] : memref<4x1024xf32, #tpu.memory_space<vmem>>, vector<4x768xf32>
    %c16 = arith.constant 16 : index
    %c0_15 = arith.constant 0 : index
    %14 = vector.load %arg12[%c16, %c0_15] : memref<36x768xf32, #tpu.memory_space<vmem>>, vector<4x768xf32>
    tpu.vector_store %arg12[%c16, %c0_15], %13 {strides = array<i32>} : memref<36x768xf32, #tpu.memory_space<vmem>>, vector<4x768xf32>,
    %c0_16 = arith.constant 0 : index
    %c129 = arith.constant 129 : index
    %15 = vector.load %arg2[%c0_16, %c129] : memref<4x1024xf32, #tpu.memory_space<vmem>>, vector<4x768xf32>
    %c20 = arith.constant 20 : index
    %c0_17 = arith.constant 0 : index
    %16 = vector.load %arg12[%c20, %c0_17] : memref<36x768xf32, #tpu.memory_space<vmem>>, vector<4x768xf32>
    tpu.vector_store %arg12[%c20, %c0_17], %15 {strides = array<i32>} : memref<36x768xf32, #tpu.memory_space<vmem>>, vector<4x768xf32>,
    %c0_18 = arith.constant 0 : index
    %c145 = arith.constant 145 : index
    %17 = vector.load %arg2[%c0_18, %c145] : memref<4x1024xf32, #tpu.memory_space<vmem>>, vector<4x768xf32>
    %c24 = arith.constant 24 : index
    %c0_19 = arith.constant 0 : index
    %18 = vector.load %arg12[%c24, %c0_19] : memref<36x768xf32, #tpu.memory_space<vmem>>, vector<4x768xf32>
    tpu.vector_store %arg12[%c24, %c0_19], %17 {strides = array<i32>} : memref<36x768xf32, #tpu.memory_space<vmem>>, vector<4x768xf32>,
    %c0_20 = arith.constant 0 : index
    %c146 = arith.constant 146 : index
    %19 = vector.load %arg2[%c0_20, %c146] : memref<4x1024xf32, #tpu.memory_space<vmem>>, vector<4x768xf32>
    %c28 = arith.constant 28 : index
    %c0_21 = arith.constant 0 : index
    %20 = vector.load %arg12[%c28, %c0_21] : memref<36x768xf32, #tpu.memory_space<vmem>>, vector<4x768xf32>
    tpu.vector_store %arg12[%c28, %c0_21], %19 {strides = array<i32>} : memref<36x768xf32, #tpu.memory_space<vmem>>, vector<4x768xf32>,
    %c0_22 = arith.constant 0 : index
    %c147 = arith.constant 147 : index
    %21 = vector.load %arg2[%c0_22, %c147] : memref<4x1024xf32, #tpu.memory_space<vmem>>, vector<4x768xf32>
    %c32 = arith.constant 32 : index
    %c0_23 = arith.constant 0 : index
    %22 = vector.load %arg12[%c32, %c0_23] : memref<36x768xf32, #tpu.memory_space<vmem>>, vector<4x768xf32>
    tpu.vector_store %arg12[%c32, %c0_23], %21 {strides = array<i32>} : memref<36x768xf32, #tpu.memory_space<vmem>>, vector<4x768xf32>,
    %c0_24 = arith.constant 0 : index
    %c0_25 = arith.constant 0 : index
    %23 = vector.load %arg3[%c0_24, %c0_25] : memref<16x36xf32, #tpu.memory_space<vmem>>, vector<16x36xf32>
    %c0_26 = arith.constant 0 : index
    %c0_27 = arith.constant 0 : index
    %24 = vector.load %arg12[%c0_26, %c0_27] : memref<36x768xf32, #tpu.memory_space<vmem>>, vector<36x768xf32>
    %cst_28 = arith.constant dense<0.000000e+00> : vector<16x768xf32>
    %25 = tpu.matmul %23, %24, %cst_28 {dimension_numbers = #tpu.dot_dimension_numbers<[1], [0], [0], [1], [0, 0, 1, 1], [], []>} : vector<16x36xf32>, vector<36x768xf32>, vector<16x768xf32> -> vector<16x768xf32>
    %c0_29 = arith.constant 0 : index
    %c0_30 = arith.constant 0 : index
    %26 = vector.load %arg6[%c0_29, %c0_30] : memref<16x1xf32, #tpu.memory_space<vmem>>, vector<16x1xf32>
    %27 = vector.broadcast %26 : vector<16x1xf32> to vector<16x768xf32>
    %28 = arith.addf %25, %27 : vector<16x768xf32>
    %cst_31 = arith.constant 0.000000e+00 : f32
    %29 = vector.broadcast %cst_31 : f32 to vector<16x768xf32>
    %30 = arith.cmpf ogt, %28, %29 : vector<16x768xf32>
    %c0_32 = arith.constant 0 : index
    %31 = memref.load %arg1[%c0_32] : memref<3xf32, #tpu.memory_space<smem>>
    %32 = vector.broadcast %31 : f32 to vector<16x768xf32>
    %33 = arith.mulf %32, %28 : vector<16x768xf32>
    %34 = arith.select %30, %28, %33 : vector<16x768xi1>, vector<16x768xf32>
    %35 = vector.broadcast %4 : vector<1x768xf32> to vector<16x768xf32>
    %36 = arith.mulf %34, %35 : vector<16x768xf32>
    %c0_33 = arith.constant 0 : index
    %c128_34 = arith.constant 128 : index
    %37 = vector.load %arg11[%c0_33, %c128_34] : memref<20x1024xf32, #tpu.memory_space<vmem>>, vector<16x768xf32>
    tpu.vector_store %arg11[%c0_33, %c128_34], %36 {strides = array<i32>} : memref<20x1024xf32, #tpu.memory_space<vmem>>, vector<16x768xf32>,
    %c0_35 = arith.constant 0 : index
    %c109_36 = arith.constant 109 : index
    %38 = vector.load %arg11[%c0_35, %c109_36] : memref<20x1024xf32, #tpu.memory_space<vmem>>, vector<16x768xf32>
    %c0_37 = arith.constant 0 : index
    %c0_38 = arith.constant 0 : index
    %39 = vector.load %arg13[%c0_37, %c0_38] : memref<144x768xf32, #tpu.memory_space<vmem>>, vector<16x768xf32>
    tpu.vector_store %arg13[%c0_37, %c0_38], %38 {strides = array<i32>} : memref<144x768xf32, #tpu.memory_space<vmem>>, vector<16x768xf32>,
    %c0_39 = arith.constant 0 : index
    %c110_40 = arith.constant 110 : index
    %40 = vector.load %arg11[%c0_39, %c110_40] : memref<20x1024xf32, #tpu.memory_space<vmem>>, vector<16x768xf32>
    %c16_41 = arith.constant 16 : index
    %c0_42 = arith.constant 0 : index
    %41 = vector.load %arg13[%c16_41, %c0_42] : memref<144x768xf32, #tpu.memory_space<vmem>>, vector<16x768xf32>
    tpu.vector_store %arg13[%c16_41, %c0_42], %40 {strides = array<i32>} : memref<144x768xf32, #tpu.memory_space<vmem>>, vector<16x768xf32>,
    %c0_43 = arith.constant 0 : index
    %c111_44 = arith.constant 111 : index
    %42 = vector.load %arg11[%c0_43, %c111_44] : memref<20x1024xf32, #tpu.memory_space<vmem>>, vector<16x768xf32>
    %c32_45 = arith.constant 32 : index
    %c0_46 = arith.constant 0 : index
    %43 = vector.load %arg13[%c32_45, %c0_46] : memref<144x768xf32, #tpu.memory_space<vmem>>, vector<16x768xf32>
    tpu.vector_store %arg13[%c32_45, %c0_46], %42 {strides = array<i32>} : memref<144x768xf32, #tpu.memory_space<vmem>>, vector<16x768xf32>,
    %c0_47 = arith.constant 0 : index
    %c127_48 = arith.constant 127 : index
    %44 = vector.load %arg11[%c0_47, %c127_48] : memref<20x1024xf32, #tpu.memory_space<vmem>>, vector<16x768xf32>
    %c48 = arith.constant 48 : index
    %c0_49 = arith.constant 0 : index
    %45 = vector.load %arg13[%c48, %c0_49] : memref<144x768xf32, #tpu.memory_space<vmem>>, vector<16x768xf32>
    tpu.vector_store %arg13[%c48, %c0_49], %44 {strides = array<i32>} : memref<144x768xf32, #tpu.memory_space<vmem>>, vector<16x768xf32>,
    %c0_50 = arith.constant 0 : index
    %c128_51 = arith.constant 128 : index
    %46 = vector.load %arg11[%c0_50, %c128_51] : memref<20x1024xf32, #tpu.memory_space<vmem>>, vector<16x768xf32>
    %c64 = arith.constant 64 : index
    %c0_52 = arith.constant 0 : index
    %47 = vector.load %arg13[%c64, %c0_52] : memref<144x768xf32, #tpu.memory_space<vmem>>, vector<16x768xf32>
    tpu.vector_store %arg13[%c64, %c0_52], %46 {strides = array<i32>} : memref<144x768xf32, #tpu.memory_space<vmem>>, vector<16x768xf32>,
    %c0_53 = arith.constant 0 : index
    %c129_54 = arith.constant 129 : index
    %48 = vector.load %arg11[%c0_53, %c129_54] : memref<20x1024xf32, #tpu.memory_space<vmem>>, vector<16x768xf32>
    %c80 = arith.constant 80 : index
    %c0_55 = arith.constant 0 : index
    %49 = vector.load %arg13[%c80, %c0_55] : memref<144x768xf32, #tpu.memory_space<vmem>>, vector<16x768xf32>
    tpu.vector_store %arg13[%c80, %c0_55], %48 {strides = array<i32>} : memref<144x768xf32, #tpu.memory_space<vmem>>, vector<16x768xf32>,
    %c0_56 = arith.constant 0 : index
    %c145_57 = arith.constant 145 : index
    %50 = vector.load %arg11[%c0_56, %c145_57] : memref<20x1024xf32, #tpu.memory_space<vmem>>, vector<16x768xf32>
    %c96 = arith.constant 96 : index
    %c0_58 = arith.constant 0 : index
    %51 = vector.load %arg13[%c96, %c0_58] : memref<144x768xf32, #tpu.memory_space<vmem>>, vector<16x768xf32>
    tpu.vector_store %arg13[%c96, %c0_58], %50 {strides = array<i32>} : memref<144x768xf32, #tpu.memory_space<vmem>>, vector<16x768xf32>,
    %c0_59 = arith.constant 0 : index
    %c146_60 = arith.constant 146 : index
    %52 = vector.load %arg11[%c0_59, %c146_60] : memref<20x1024xf32, #tpu.memory_space<vmem>>, vector<16x768xf32>
    %c112 = arith.constant 112 : index
    %c0_61 = arith.constant 0 : index
    %53 = vector.load %arg13[%c112, %c0_61] : memref<144x768xf32, #tpu.memory_space<vmem>>, vector<16x768xf32>
    tpu.vector_store %arg13[%c112, %c0_61], %52 {strides = array<i32>} : memref<144x768xf32, #tpu.memory_space<vmem>>, vector<16x768xf32>,
    %c0_62 = arith.constant 0 : index
    %c147_63 = arith.constant 147 : index
    %54 = vector.load %arg11[%c0_62, %c147_63] : memref<20x1024xf32, #tpu.memory_space<vmem>>, vector<16x768xf32>
    %c128_64 = arith.constant 128 : index
    %c0_65 = arith.constant 0 : index
    %55 = vector.load %arg13[%c128_64, %c0_65] : memref<144x768xf32, #tpu.memory_space<vmem>>, vector<16x768xf32>
    tpu.vector_store %arg13[%c128_64, %c0_65], %54 {strides = array<i32>} : memref<144x768xf32, #tpu.memory_space<vmem>>, vector<16x768xf32>,
    %c0_66 = arith.constant 0 : index
    %c0_67 = arith.constant 0 : index
    %56 = vector.load %arg4[%c0_66, %c0_67] : memref<4x144xf32, #tpu.memory_space<vmem>>, vector<4x144xf32>
    %c0_68 = arith.constant 0 : index
    %c0_69 = arith.constant 0 : index
    %57 = vector.load %arg13[%c0_68, %c0_69] : memref<144x768xf32, #tpu.memory_space<vmem>>, vector<144x768xf32>
    %cst_70 = arith.constant dense<0.000000e+00> : vector<4x768xf32>
    %58 = tpu.matmul %56, %57, %cst_70 {dimension_numbers = #tpu.dot_dimension_numbers<[1], [0], [0], [1], [0, 0, 1, 1], [], []>} : vector<4x144xf32>, vector<144x768xf32>, vector<4x768xf32> -> vector<4x768xf32>
    %c0_71 = arith.constant 0 : index
    %c0_72 = arith.constant 0 : index
    %59 = vector.load %arg7[%c0_71, %c0_72] : memref<4x1xf32, #tpu.memory_space<vmem>>, vector<4x1xf32>
    %60 = vector.broadcast %59 : vector<4x1xf32> to vector<4x768xf32>
    %61 = arith.addf %58, %60 : vector<4x768xf32>
    %cst_73 = arith.constant 0.000000e+00 : f32
    %62 = vector.broadcast %cst_73 : f32 to vector<4x768xf32>
    %63 = arith.cmpf ogt, %61, %62 : vector<4x768xf32>
    %c1 = arith.constant 1 : index
    %64 = memref.load %arg1[%c1] : memref<3xf32, #tpu.memory_space<smem>>
    %65 = vector.broadcast %64 : f32 to vector<4x768xf32>
    %66 = arith.mulf %65, %61 : vector<4x768xf32>
    %67 = arith.select %63, %61, %66 : vector<4x768xi1>, vector<4x768xf32>
    %68 = vector.broadcast %4 : vector<1x768xf32> to vector<4x768xf32>
    %69 = arith.mulf %67, %68 : vector<4x768xf32>
    %c0_74 = arith.constant 0 : index
    %c128_75 = arith.constant 128 : index
    %70 = vector.load %arg2[%c0_74, %c128_75] : memref<4x1024xf32, #tpu.memory_space<vmem>>, vector<4x768xf32>
    %71 = arith.subf %69, %70 : vector<4x768xf32>
    %c16_76 = arith.constant 16 : index
    %c128_77 = arith.constant 128 : index
    %72 = vector.load %arg11[%c16_76, %c128_77] : memref<20x1024xf32, #tpu.memory_space<vmem>>, vector<4x768xf32>
    tpu.vector_store %arg11[%c16_76, %c128_77], %71 {strides = array<i32>} : memref<20x1024xf32, #tpu.memory_space<vmem>>, vector<4x768xf32>,
    %c16_78 = arith.constant 16 : index
    %c109_79 = arith.constant 109 : index
    %73 = vector.load %arg11[%c16_78, %c109_79] : memref<20x1024xf32, #tpu.memory_space<vmem>>, vector<4x768xf32>
    %c0_80 = arith.constant 0 : index
    %c0_81 = arith.constant 0 : index
    %74 = vector.load %arg12[%c0_80, %c0_81] : memref<36x768xf32, #tpu.memory_space<vmem>>, vector<4x768xf32>
    tpu.vector_store %arg12[%c0_80, %c0_81], %73 {strides = array<i32>} : memref<36x768xf32, #tpu.memory_space<vmem>>, vector<4x768xf32>,
    %c16_82 = arith.constant 16 : index
    %c110_83 = arith.constant 110 : index
    %75 = vector.load %arg11[%c16_82, %c110_83] : memref<20x1024xf32, #tpu.memory_space<vmem>>, vector<4x768xf32>
    %c4_84 = arith.constant 4 : index
    %c0_85 = arith.constant 0 : index
    %76 = vector.load %arg12[%c4_84, %c0_85] : memref<36x768xf32, #tpu.memory_space<vmem>>, vector<4x768xf32>
    tpu.vector_store %arg12[%c4_84, %c0_85], %75 {strides = array<i32>} : memref<36x768xf32, #tpu.memory_space<vmem>>, vector<4x768xf32>,
    %c16_86 = arith.constant 16 : index
    %c111_87 = arith.constant 111 : index
    %77 = vector.load %arg11[%c16_86, %c111_87] : memref<20x1024xf32, #tpu.memory_space<vmem>>, vector<4x768xf32>
    %c8_88 = arith.constant 8 : index
    %c0_89 = arith.constant 0 : index
    %78 = vector.load %arg12[%c8_88, %c0_89] : memref<36x768xf32, #tpu.memory_space<vmem>>, vector<4x768xf32>
    tpu.vector_store %arg12[%c8_88, %c0_89], %77 {strides = array<i32>} : memref<36x768xf32, #tpu.memory_space<vmem>>, vector<4x768xf32>,
    %c16_90 = arith.constant 16 : index
    %c127_91 = arith.constant 127 : index
    %79 = vector.load %arg11[%c16_90, %c127_91] : memref<20x1024xf32, #tpu.memory_space<vmem>>, vector<4x768xf32>
    %c12_92 = arith.constant 12 : index
    %c0_93 = arith.constant 0 : index
    %80 = vector.load %arg12[%c12_92, %c0_93] : memref<36x768xf32, #tpu.memory_space<vmem>>, vector<4x768xf32>
    tpu.vector_store %arg12[%c12_92, %c0_93], %79 {strides = array<i32>} : memref<36x768xf32, #tpu.memory_space<vmem>>, vector<4x768xf32>,
    %c16_94 = arith.constant 16 : index
    %c128_95 = arith.constant 128 : index
    %81 = vector.load %arg11[%c16_94, %c128_95] : memref<20x1024xf32, #tpu.memory_space<vmem>>, vector<4x768xf32>
    %c16_96 = arith.constant 16 : index
    %c0_97 = arith.constant 0 : index
    %82 = vector.load %arg12[%c16_96, %c0_97] : memref<36x768xf32, #tpu.memory_space<vmem>>, vector<4x768xf32>
    tpu.vector_store %arg12[%c16_96, %c0_97], %81 {strides = array<i32>} : memref<36x768xf32, #tpu.memory_space<vmem>>, vector<4x768xf32>,
    %c16_98 = arith.constant 16 : index
    %c129_99 = arith.constant 129 : index
    %83 = vector.load %arg11[%c16_98, %c129_99] : memref<20x1024xf32, #tpu.memory_space<vmem>>, vector<4x768xf32>
    %c20_100 = arith.constant 20 : index
    %c0_101 = arith.constant 0 : index
    %84 = vector.load %arg12[%c20_100, %c0_101] : memref<36x768xf32, #tpu.memory_space<vmem>>, vector<4x768xf32>
    tpu.vector_store %arg12[%c20_100, %c0_101], %83 {strides = array<i32>} : memref<36x768xf32, #tpu.memory_space<vmem>>, vector<4x768xf32>,
    %c16_102 = arith.constant 16 : index
    %c145_103 = arith.constant 145 : index
    %85 = vector.load %arg11[%c16_102, %c145_103] : memref<20x1024xf32, #tpu.memory_space<vmem>>, vector<4x768xf32>
    %c24_104 = arith.constant 24 : index
    %c0_105 = arith.constant 0 : index
    %86 = vector.load %arg12[%c24_104, %c0_105] : memref<36x768xf32, #tpu.memory_space<vmem>>, vector<4x768xf32>
    tpu.vector_store %arg12[%c24_104, %c0_105], %85 {strides = array<i32>} : memref<36x768xf32, #tpu.memory_space<vmem>>, vector<4x768xf32>,
    %c16_106 = arith.constant 16 : index
    %c146_107 = arith.constant 146 : index
    %87 = vector.load %arg11[%c16_106, %c146_107] : memref<20x1024xf32, #tpu.memory_space<vmem>>, vector<4x768xf32>
    %c28_108 = arith.constant 28 : index
    %c0_109 = arith.constant 0 : index
    %88 = vector.load %arg12[%c28_108, %c0_109] : memref<36x768xf32, #tpu.memory_space<vmem>>, vector<4x768xf32>
    tpu.vector_store %arg12[%c28_108, %c0_109], %87 {strides = array<i32>} : memref<36x768xf32, #tpu.memory_space<vmem>>, vector<4x768xf32>,
    %c16_110 = arith.constant 16 : index
    %c147_111 = arith.constant 147 : index
    %89 = vector.load %arg11[%c16_110, %c147_111] : memref<20x1024xf32, #tpu.memory_space<vmem>>, vector<4x768xf32>
    %c32_112 = arith.constant 32 : index
    %c0_113 = arith.constant 0 : index
    %90 = vector.load %arg12[%c32_112, %c0_113] : memref<36x768xf32, #tpu.memory_space<vmem>>, vector<4x768xf32>
    tpu.vector_store %arg12[%c32_112, %c0_113], %89 {strides = array<i32>} : memref<36x768xf32, #tpu.memory_space<vmem>>, vector<4x768xf32>,
    %c0_114 = arith.constant 0 : index
    %c0_115 = arith.constant 0 : index
    %91 = vector.load %arg5[%c0_114, %c0_115] : memref<16x36xf32, #tpu.memory_space<vmem>>, vector<16x36xf32>
    %c0_116 = arith.constant 0 : index
    %c0_117 = arith.constant 0 : index
    %92 = vector.load %arg12[%c0_116, %c0_117] : memref<36x768xf32, #tpu.memory_space<vmem>>, vector<36x768xf32>
    %cst_118 = arith.constant dense<0.000000e+00> : vector<16x768xf32>
    %93 = tpu.matmul %91, %92, %cst_118 {dimension_numbers = #tpu.dot_dimension_numbers<[1], [0], [0], [1], [0, 0, 1, 1], [], []>} : vector<16x36xf32>, vector<36x768xf32>, vector<16x768xf32> -> vector<16x768xf32>
    %c0_119 = arith.constant 0 : index
    %c0_120 = arith.constant 0 : index
    %94 = vector.load %arg8[%c0_119, %c0_120] : memref<16x1xf32, #tpu.memory_space<vmem>>, vector<16x1xf32>
    %95 = vector.broadcast %94 : vector<16x1xf32> to vector<16x768xf32>
    %96 = arith.addf %93, %95 : vector<16x768xf32>
    %cst_121 = arith.constant 0.000000e+00 : f32
    %97 = vector.broadcast %cst_121 : f32 to vector<16x768xf32>
    %98 = arith.cmpf ogt, %96, %97 : vector<16x768xf32>
    %c2 = arith.constant 2 : index
    %99 = memref.load %arg1[%c2] : memref<3xf32, #tpu.memory_space<smem>>
    %100 = vector.broadcast %99 : f32 to vector<16x768xf32>
    %101 = arith.mulf %100, %96 : vector<16x768xf32>
    %102 = arith.select %98, %96, %101 : vector<16x768xi1>, vector<16x768xf32>
    %c0_122 = arith.constant 0 : index
    %c128_123 = arith.constant 128 : index
    %103 = vector.load %arg11[%c0_122, %c128_123] : memref<20x1024xf32, #tpu.memory_space<vmem>>, vector<16x768xf32>
    %104 = arith.addf %102, %103 : vector<16x768xf32>
    %c0_124 = arith.constant 0 : index
    %c0_125 = arith.constant 0 : index
    %105 = vector.load %arg10[%c0_124, %c0_125] : memref<16x768xf32, #tpu.memory_space<vmem>>, vector<16x768xf32>
    tpu.vector_store %arg10[%c0_124, %c0_125], %104 {strides = array<i32>} : memref<16x768xf32, #tpu.memory_space<vmem>>, vector<16x768xf32>,
    return
  }
  func.func @transform_0(%arg0: i32) -> i32 {
    %c0_i32 = arith.constant 0 : i32
    %c0_i32_0 = arith.constant 0 : i32
    return %c0_i32 : i32
  }
  func.func @transform_1(%arg0: i32) -> (i32, i32) {
    %c0_i32 = arith.constant 0 : i32
    %c0_i32_0 = arith.constant 0 : i32
    %c0_i32_1 = arith.constant 0 : i32
    return %c0_i32, %c0_i32_0 : i32, i32
  }
  func.func @transform_2(%arg0: i32) -> (i32, i32) {
    %c0_i32 = arith.constant 0 : i32
    %c0_i32_0 = arith.constant 0 : i32
    %c0_i32_1 = arith.constant 0 : i32
    return %c0_i32, %c0_i32_0 : i32, i32
  }
  func.func @transform_3(%arg0: i32) -> (i32, i32) {
    %c0_i32 = arith.constant 0 : i32
    %c0_i32_0 = arith.constant 0 : i32
    %c0_i32_1 = arith.constant 0 : i32
    return %c0_i32, %c0_i32_0 : i32, i32
  }
  func.func @transform_4(%arg0: i32) -> (i32, i32) {
    %c0_i32 = arith.constant 0 : i32
    %c0_i32_0 = arith.constant 0 : i32
    %c0_i32_1 = arith.constant 0 : i32
    return %c0_i32, %c0_i32_0 : i32, i32
  }
  func.func @transform_5(%arg0: i32) -> (i32, i32) {
    %c0_i32 = arith.constant 0 : i32
    %c0_i32_0 = arith.constant 0 : i32
    %c0_i32_1 = arith.constant 0 : i32
    return %c0_i32, %c0_i32_0 : i32, i32
  }
  func.func @transform_6(%arg0: i32) -> (i32, i32) {
    %c0_i32 = arith.constant 0 : i32
    %c0_i32_0 = arith.constant 0 : i32
    %c0_i32_1 = arith.constant 0 : i32
    return %c0_i32, %c0_i32_0 : i32, i32
  }
  func.func @transform_7(%arg0: i32) -> (i32, i32) {
    %c0_i32 = arith.constant 0 : i32
    %c0_i32_0 = arith.constant 0 : i32
    %c0_i32_1 = arith.constant 0 : i32
    return %c0_i32, %c0_i32_0 : i32, i32
  }
  func.func @transform_8(%arg0: i32) -> (i32, i32) {
    %c0_i32 = arith.constant 0 : i32
    %c0_i32_0 = arith.constant 0 : i32
    %c0_i32_1 = arith.constant 0 : i32
    return %c0_i32, %c0_i32_0 : i32, i32
  }
  func.func @transform_9(%arg0: i32) -> (i32, i32) {
    %c0_i32 = arith.constant 0 : i32
    %c0_i32_0 = arith.constant 0 : i32
    %c0_i32_1 = arith.constant 0 : i32
    return %c0_i32, %c0_i32_0 : i32, i32
  }
}

</mosaic_0001>

<bundles_post_ra>
// kernel: tpu_custom_call.1
= control target key start
LH: loop header
LB: loop body
LE: loop exit
PB: predicated region body
PF: predicated region fallthrough
CT: control target
= control target key end

     0   :  { %14 = vsyncpa [#allocation8], 0  ;;  %s4634_s0 = inlined_call_operand.hbm [shape: f32[3], index: 0, kind: input, shape index: {}]   ;;  %s4635_s1 = inlined_call_operand.vmem [shape: f32[4,1024], index: 1, kind: input, shape index: {}]   ;;  %s4636_s2 = inlined_call_operand.hbm [shape: f32[16,36], index: 2, kind: input, shape index: {}]   ;;  %s4637_s3 = inlined_call_operand.hbm [shape: f32[4,144], index: 3, kind: input, shape index: {}]   ;;  %s4638_s4 = inlined_call_operand.vmem [shape: f32[16,36], index: 4, kind: input, shape index: {}]   ;;  %s4639_s5 = inlined_call_operand.vmem [shape: f32[16,1], index: 5, kind: input, shape index: {}]   ;;  %s4640_s6 = inlined_call_operand.vmem [shape: f32[4,1], index: 6, kind: input, shape index: {}]   ;;  %s4641_s7 = inlined_call_operand.vmem [shape: f32[16,1], index: 7, kind: input, shape index: {}]   ;;  %s4642_s8 = inlined_call_operand.vmem [shape: f32[1,768], index: 8, kind: input, shape index: {}]   ;;  %s4643_s9 = inlined_call_operand.hbm [shape: f32[16,768], index: 9, kind: output, shape index: {}]  }
   0x1   :  { %15 = vsyncpa [#allocation6], 0 }
   0x2   :  { %16 = vsyncpa [#allocation11], 0 }
   0x3   :  { %17 = vsyncpa [#allocation7], 0  ;;  %s3294_s11 = scalar_lea.hbm %s4634_s0, 16 }
   0x4   :  { %p3295_p0 = scmp.ne.s32.totalorder %s4634_s0, %s3294_s11  ;;  %p3298_p1 = scmp.lt.u32.totalorder %s3294_s11, %s4634_s0 }
   0x6   :  { %p3300_p2 = pnand %p3298_p1, %p3295_p0 }
   0x8   :  { %3303 = shalt.err (!%p3300_p2)
}
   0x9   :  { %s3378_s16 = smov [#allocation5]   ;;  %s3379_s19 = smov [#allocation9]  }
   0xa   :  { %25 = dma.hbm_to_smem %s4634_s0, 16, %s3378_s16, [#allocation8]  }
   0xb   :  { %s33_s20 = sshll.u32 %s3379_s19, 4  ;;  %s3304_s23 = scalar_lea.hbm %s4636_s2, 256  ;;  %s34_s20 = int_to_ptr.vmem [resolvable:$true] %s33_s20 }
   0xc   :  { %p3305_p3 = scmp.ne.s32.totalorder %s4636_s2, %s3304_s23  ;;  %p3308_p4 = scmp.lt.u32.totalorder %s3304_s23, %s4636_s2 }
   0xe   :  { %p3310_p5 = pnand %p3308_p4, %p3305_p3 }
  0x10   :  { %3313 = shalt.err (!%p3310_p5)
}
  0x11   :  { %s3314_s28 = scalar_lea.vmem %s34_s20, 256  ;;  %p3319_p7 = scmp.lt.s32.totalorder %s34_s20, %s34_s20 }
  0x12   :  { %p3315_p6 = scmp.ne.s32.totalorder %s34_s20, %s3314_s28  ;;  %p3320_p8 = scmp.lt.s32.totalorder %s3314_s28, %s3314_s28 }
  0x14   :  { %p3321_p9 = por %p3320_p8, %p3319_p7 }
  0x16   :  { %p3322_p10 = pnand %p3321_p9, %p3315_p6 }
  0x18   :  { %3325 = shalt.err (!%p3322_p10)
}
  0x19   :  { %s3380_s0 = smov 128   ;;  %s3381_s29 = smov 8  }
  0x1a   :  { %39 = dma.hbm_to_vmem [thread:$0]  %s4636_s2, 256, %s34_s20, [#allocation6], %s3380_s0, %s3380_s0, %s3381_s29  }
  0x1b   :  { %s3382_s11 = smov [#allocation10]   ;;  %s3326_s15 = scalar_lea.hbm %s4637_s3, 128 }
  0x1c   :  { %s46_s12 = sshll.u32 %s3382_s11, 4  ;;  %p3327_p11 = scmp.ne.s32.totalorder %s4637_s3, %s3326_s15  ;;  %s47_s12 = int_to_ptr.vmem [resolvable:$true] %s46_s12 }
  0x1d   :  { %p3330_p12 = scmp.lt.u32.totalorder %s3326_s15, %s4637_s3 }
  0x1f   :  { %p3332_p13 = pnand %p3330_p12, %p3327_p11 }
  0x21   :  { %3335 = shalt.err (!%p3332_p13)
}
  0x22   :  { %s3336_s21 = scalar_lea.vmem %s47_s12, 128  ;;  %p3341_p1 = scmp.lt.s32.totalorder %s47_s12, %s47_s12 }
  0x23   :  { %p3337_p0 = scmp.ne.s32.totalorder %s47_s12, %s3336_s21  ;;  %p3342_p2 = scmp.lt.s32.totalorder %s3336_s21, %s3336_s21 }
  0x25   :  { %p3343_p3 = por %p3342_p2, %p3341_p1 }
  0x27   :  { %p3344_p4 = pnand %p3343_p3, %p3337_p0 }
  0x29   :  { %3347 = shalt.err (!%p3344_p4)
}
  0x2a   :  { %49 = dma.hbm_to_vmem [thread:$0]  %s4637_s3, 128, %s47_s12, [#allocation11]  }
  0x2b   :  { %3370 = dma.done.wait [#allocation8], 16  }
  0x2c   :  { %3371 = vsyncadd [#allocation8], 4294967280 }
  0x2d   :  { %3372 = dma.done.wait [#allocation6], 256  }
  0x2e   :  { %3373 = vsyncadd [#allocation6], 4294967040 }
  0x2f   :  { %3374 = dma.done.wait [#allocation11], 128  }
  0x30   :  { %3375 = vsyncadd [#allocation11], 4294967168 }
  0x31   :  { %69 = sfence }
  0x32   :  { %v121_v0 = vld [vmem:[%s4635_s1] sm:$0xff]  ;;  %v3488_v1 = vld [vmem:[%s4635_s1 + $0x8] sm:$0xff]  ;;  %s3383_s3 = smov 18   ;;  %v3504_v6 = vld [vmem:[%s4635_s1 + $0x14] sm:$0xff]  ;;  %s3384_s10 = smov 19   ;;  %v3391_v17 = vmov 0.0  }
  0x33   :  { %v3493_v2 = vld [vmem:[%s4635_s1 + $0xc] sm:$0xff]  ;;  %135 = vrot.lane.b32.xlu1 %v121_v0, %s3383_s3  ;;  %v85_v3 = vcombine.high %v121_v0, %v121_v0  ;;  %v130_v4 = vcombine.low %v3488_v1, %v3488_v1  ;;  %v273_v5 = vld [vmem:[%s4635_s1 + $0x4] sm:$0xff]  ;;  %271 = vst [vmem:[#allocation3 + $0x80] sm:$0xf] %v3504_v6  ;;  %v3515_v9 = vcombine.high %v3504_v6, %v3504_v6  ;;  %s3385_s11 = smov 17   ;;  %s3386_s12 = smov 1  }
  0x34   :  { %269 = vst [vmem:[#allocation3 + $0x70] sm:$0xf] %v3493_v2  ;;  %v3509_v7 = vcombine.high %v3493_v2, %v3493_v2  ;;  %v326_v8 = vcombine.high %v273_v5, %v273_v5  ;;  %267 = vst [vmem:[#allocation3 + $0x60] sm:$0xf] %v273_v5  ;;  %v129_v10 = vcombine.low %v121_v0, %v121_v0  ;;  %s3387_s13 = smov 127   ;;  %s3388_s14 = smov 111   ;;  %585 = vmatprep.mubr.f32.mxu0 %v3391_v17 }
  0x35   :  { %90 = vrot.lane.b32.xlu0 %v85_v3, %s3384_s10  ;;  %272 = vst [vmem:[#allocation3 + $0x88] sm:$0xf] %v3515_v9  ;;  %v282_v11 = vcombine.low %v3493_v2, %v3493_v2  ;;  %s3389_s15 = smov 110   ;;  %v281_v12 = vcombine.low %v273_v5, %v273_v5  ;;  %s3390_s16 = smov 109   ;;  %v79_v13 = vld [vmem:[%s4635_s1 + $0x10] sm:$0xff]  ;;  %v86_v14 = vcombine.high %v3488_v1, %v3488_v1  ;;  %70 = vst [vmem:[#allocation2] sm:$0xff] %v3391_v17 }
  0x36   :  { %268 = vst [vmem:[#allocation3 + $0x68] sm:$0xf] %v326_v8  ;;  %270 = vst [vmem:[#allocation3 + $0x78] sm:$0xf] %v3509_v7  ;;  %v131_v15 = vcombine.low %v79_v13, %v79_v13  ;;  %v283_v16 = vcombine.low %v3504_v6, %v3504_v6  ;;  %662 = vmatprep.mubr.f32.mxu1 %v3391_v17  ;;  %v80_v18 = vld [vmem:[%s4635_s1 + $0x18] sm:$0xf]  ;;  %v87_v19 = vcombine.high %v79_v13, %v79_v13 }
  0x37   :  { %137 = vrot.lane.b32.xlu1 %v130_v4, %s3383_s3  ;;  %72 = vst [vmem:[#allocation2 + $0x80] sm:$0xf] %v3391_v17  ;;  %75 = vst [vmem:[#allocation2 + $0xb8] sm:$0xf] %v3391_v17  ;;  %v3285_v20 = vld [vmem:[%s4635_s1 + $0x18] ss:$0 sps:$4 sm:$0xff]  }
  0x38   :  { %v169_v21 = vld [vmem:[%s4635_s1 + $0x18] sm:$0xf]  ;;  %v3287_v23 = vld [vmem:[%s4635_s1 + $0x1c] ss:$0 sps:$4 sm:$0xff]   ;;  %v483_v28 = vld [vmem:[%s4639_s5] sm:$0xff]  ;;  %v3392_v30 = vmov 0  }
  0x39   :  { %92 = vrot.lane.b32.xlu0 %v3488_v1, %s3384_s10  ;;  %v3286_v22 = vld [vmem:[%s4635_s1 + $0x18] ss:$0 sps:$4 sm:$0xff]   ;;  %v321_v24 = vld [vmem:[%s4635_s1 + $0x1c] sm:$0xf]  ;;  %v484_v29 = vld [vmem:[%s4639_s5 + $0x8] sm:$0xff]  ;;  %2992 = vset.pattern.permute.xlu1 %v3392_v30  ;;  %vm147_vm0 = vcmask 146432  }
  0x3a   :  { %v3288_v25 = vld [vmem:[%s4635_s1 + $0x1c] ss:$0 sps:$4 sm:$0xff]   ;;  %2991 = vset.pattern.permute.xlu0 %v3392_v30  ;;  %vm102_vm1 = vcmask 154624   ;;  %vm191_vm2 = vcmask 138240   ;;  %vm236_vm3 = vcmask 7168   ;;  %vm299_vm4 = vcmask 1039360  }
  0x3b   :  { %181 = vrot.lane.b32.xlu1 %v3488_v1, %s3385_s11  ;;  %v410_v26 = vld [vmem:[%s4635_s1 + $0x1c] sm:$0xf]  ;;  %vm343_vm5 = vcmask 908288   ;;  %vm388_vm6 = vcmask 900096   ;;  %vm432_vm7 = vcmask 891904   ;;  %vm502_vm8 = vcmask 1043456  }
  0x3c   :  { %vm495_vm9 = vcmask 293888   ;;  %s764_s23 = sld [smem:[#allocation5]] }
  0x3d   :  { %179 = vrot.lane.b32.xlu0 %v85_v3, %s3385_s11 }
  0x3f   :  { %226 = vrot.lane.b32.xlu1 %v130_v4, %s3386_s12 }
  0x41   :  { %224 = vrot.lane.b32.xlu0 %v121_v0, %s3386_s12 }
  0x43   :  { %133 = vrot.lane.b32.xlu1 %v129_v10, %s3383_s3 }
  0x45   :  { %88 = vrot.lane.b32.xlu0 %v121_v0, %s3384_s10 }
  0x47   :  { %222 = vrot.lane.b32.xlu1 %v129_v10, %s3386_s12 }
  0x49   :  { %177 = vrot.lane.b32.xlu0 %v121_v0, %s3385_s11 }
  0x4b   :  { %289 = vrot.lane.b32.xlu1 %v282_v11, %s3387_s13 }
  0x4d   :  { %287 = vrot.lane.b32.xlu0 %v273_v5, %s3387_s13 }
  0x4f   :  { %333 = vrot.lane.b32.xlu1 %v3493_v2, %s3388_s14 }
  0x51   :  { %331 = vrot.lane.b32.xlu0 %v326_v8, %s3388_s14 }
  0x53   :  { %378 = vrot.lane.b32.xlu1 %v282_v11, %s3389_s15 }
  0x55   :  { %376 = vrot.lane.b32.xlu0 %v273_v5, %s3389_s15 }
  0x57   :  { %329 = vrot.lane.b32.xlu1 %v273_v5, %s3388_s14 }
  0x59   :  { %285 = vrot.lane.b32.xlu0 %v281_v12, %s3387_s13 }
  0x5b   :  { %420 = vrot.lane.b32.xlu1 %v326_v8, %s3390_s16 }
  0x5d   :  { %374 = vrot.lane.b32.xlu0 %v281_v12, %s3389_s15 }
  0x5f   :  { %418 = vrot.lane.b32.xlu1 %v273_v5, %s3390_s16 }
  0x61   :  { %422 = vrot.lane.b32.xlu0 %v3493_v2, %s3390_s16 }
  0x63   :  { %96 = vrot.lane.b32.xlu1 %v79_v13, %s3384_s10 }
  0x65   :  { %94 = vrot.lane.b32.xlu0 %v86_v14, %s3384_s10 }
  0x67   :  { %141 = vrot.lane.b32.xlu1 %v131_v15, %s3383_s3 }
  0x69   :  { %139 = vrot.lane.b32.xlu0 %v3488_v1, %s3383_s3 }
  0x6b   :  { %185 = vrot.lane.b32.xlu1 %v79_v13, %s3385_s11 }
  0x6d   :  { %183 = vrot.lane.b32.xlu0 %v86_v14, %s3385_s11 }
  0x6f   :  { %230 = vrot.lane.b32.xlu1 %v131_v15, %s3386_s12 }
  0x71   :  { %228 = vrot.lane.b32.xlu0 %v3488_v1, %s3386_s12 }
  0x73   :  { %293 = vrot.lane.b32.xlu1 %v283_v16, %s3387_s13 }
  0x75   :  { %291 = vrot.lane.b32.xlu0 %v3493_v2, %s3387_s13 }
  0x77   :  { %337 = vrot.lane.b32.xlu1 %v3504_v6, %s3388_s14 }
  0x79   :  { %335 = vrot.lane.b32.xlu0 %v3509_v7, %s3388_s14 }
  0x7b   :  { %382 = vrot.lane.b32.xlu1 %v283_v16, %s3389_s15 }
  0x7d   :  { %380 = vrot.lane.b32.xlu0 %v3493_v2, %s3389_s15 }
  0x7f   :  { %426 = vrot.lane.b32.xlu1 %v3504_v6, %s3390_s16 }
  0x81   :  { %424 = vrot.lane.b32.xlu0 %v3509_v7, %s3390_s16 }
  0x83   :  { %100 = vrot.lane.b32.xlu1 %v80_v18, %s3384_s10 }
  0x85   :  { %98 = vrot.lane.b32.xlu0 %v87_v19, %s3384_s10 }
  0x87   :  { %145 = vrot.lane.b32.xlu1 %v3285_v20, %s3383_s3 }
  0x89   :  { %143 = vrot.lane.b32.xlu0 %v79_v13, %s3383_s3 }
  0x8b   :  { %189 = vrot.lane.b32.xlu1 %v169_v21, %s3385_s11 }
  0x8d   :  { %187 = vrot.lane.b32.xlu0 %v87_v19, %s3385_s11 }
  0x8f   :  { %234 = vrot.lane.b32.xlu1 %v3286_v22, %s3386_s12 }
  0x91   :  { %232 = vrot.lane.b32.xlu0 %v79_v13, %s3386_s12 }
  0x93   :  { %297 = vrot.lane.b32.xlu1 %v3287_v23, %s3387_s13 }
  0x95   :  { %295 = vrot.lane.b32.xlu0 %v3504_v6, %s3387_s13 }
  0x97   :  { %341 = vrot.lane.b32.xlu1 %v321_v24, %s3388_s14 }
  0x99   :  { %339 = vrot.lane.b32.xlu0 %v3515_v9, %s3388_s14 }
  0x9b   :  { %386 = vrot.lane.b32.xlu1 %v3288_v25, %s3389_s15 }
  0x9d   :  { %384 = vrot.lane.b32.xlu0 %v3504_v6, %s3389_s15 }
  0x9f   :  { %430 = vrot.lane.b32.xlu1 %v410_v26, %s3390_s16 }
  0xa1   :  { %428 = vrot.lane.b32.xlu0 %v3515_v9, %s3390_s16 }
  0xa3   :  { %492 = vperm.xlu1 %2992, %v484_v29   ;;  %v3688_v29 = vld [vmem:[#allocation9] sm:$0xff] }
  0xa5   :  { %v136_v27 = vpop.permute.xlu1 %135  ;;  %487 = vperm.xlu0 %2991, %v483_v28  }
  0xa7   :  { %v91_v31 = vpop.permute.xlu0 %90  ;;  %2994 = vrot.lane.b32.xlu1 %v3391_v17, %s3384_s10 }
  0xa9   :  { %v3633_v32 = vpop.permute.xlu1 %137  ;;  %2999 = vrot.lane.b32.xlu0 %v3391_v17, %s3383_s3 }
  0xaa   :  { %v149_v33 = vsel %vm147_vm0, %v136_v27, %v3633_v32 }
  0xab   :  { %161 = vst [vmem:[#allocation3 + $0x8] sm:$0xf0] %v149_v33  ;;  %v3637_v34 = vpop.permute.xlu0 %92  ;;  %3004 = vrot.lane.b32.xlu1 %v3391_v17, %s3385_s11 }
  0xac   :  { %v104_v35 = vsel %vm102_vm1, %v91_v31, %v3637_v34 }
  0xad   :  { %116 = vst [vmem:[#allocation3 + $0x8] sm:$0xf] %v104_v35  ;;  %v3641_v36 = vpop.permute.xlu1 %181  ;;  %v3700_v35 = vld [vmem:[#allocation9 + $0x8] sm:$0xff]  ;;  %3009 = vrot.lane.b32.xlu0 %v3391_v17, %s3386_s12 }
  0xaf   :  { %v180_v37 = vpop.permute.xlu0 %179 }
  0xb0   :  { %v193_v38 = vsel %vm191_vm2, %v180_v37, %v3641_v36 }
  0xb1   :  { %205 = vst [vmem:[#allocation3 + $0x38] sm:$0xf] %v193_v38  ;;  %v3645_v39 = vpop.permute.xlu1 %226 }
  0xb3   :  { %v225_v40 = vpop.permute.xlu0 %224 }
  0xb4   :  { %v238_v41 = vsel %vm236_vm3, %v225_v40, %v3645_v39  ;;  %v454_v50 = vld [vmem:[#allocation3 + $0x8] sm:$0xff] }
  0xb5   :  { %250 = vst [vmem:[#allocation3 + $0x38] sm:$0xf0] %v238_v41  ;;  %v134_v42 = vpop.permute.xlu1 %133 }
  0xb6   :  { %v148_v43 = vsel %vm147_vm0, %v134_v42, %v136_v27 }
  0xb7   :  { %160 = vst [vmem:[#allocation3] sm:$0xf0] %v148_v43  ;;  %v89_v44 = vpop.permute.xlu0 %88 }
  0xb8   :  { %v103_v45 = vsel %vm102_vm1, %v89_v44, %v91_v31 }
  0xb9   :  { %115 = vst [vmem:[#allocation3] sm:$0xf] %v103_v45  ;;  %v223_v46 = vpop.permute.xlu1 %222 }
  0xba   :  { %v237_v47 = vsel %vm236_vm3, %v223_v46, %v225_v40 }
  0xbb   :  { %249 = vst [vmem:[#allocation3 + $0x30] sm:$0xf0] %v237_v47  ;;  %v178_v48 = vpop.permute.xlu0 %177 }
  0xbc   :  { %v192_v49 = vsel %vm191_vm2, %v178_v48, %v180_v37  ;;  %v460_v51 = vld [vmem:[#allocation3 + $0x38] sm:$0xff] }
  0xbd   :  { %204 = vst [vmem:[#allocation3 + $0x30] sm:$0xf] %v192_v49  ;;  %v3653_v52 = vpop.permute.xlu1 %289  ;;  %v2817_v53 = vpack.c.bf16 %v460_v51, %v454_v50 }
  0xbf   :  { %2818 = vmatprep.subr.bf16.mxu0 %v2817_v53  ;;  %v288_v54 = vpop.permute.xlu0 %287 }
  0xc0   :  { %v301_v55 = vsel %vm299_vm4, %v288_v54, %v3653_v52  ;;  %v453_v59 = vld [vmem:[#allocation3] sm:$0xff] }
  0xc1   :  { %313 = vst [vmem:[#allocation3 + $0x68] sm:$0xf0] %v301_v55  ;;  %v3657_v56 = vpop.permute.xlu1 %333 }
  0xc3   :  { %v332_v57 = vpop.permute.xlu0 %331 }
  0xc4   :  { %v345_v58 = vsel %vm343_vm5, %v332_v57, %v3657_v56  ;;  %v459_v60 = vld [vmem:[#allocation3 + $0x30] sm:$0xff] }
  0xc5   :  { %357 = vst [vmem:[#allocation3 + $0x98] sm:$0xf] %v345_v58  ;;  %v3661_v61 = vpop.permute.xlu1 %378  ;;  %v2819_v62 = vpack.c.bf16 %v459_v60, %v453_v59 }
  0xc7   :  { %2820 = vmatpush1.bf16.msra.mxu0 %v2819_v62  ;;  %v377_v63 = vpop.permute.xlu0 %376 }
  0xc8   :  { %v390_v0 = vsel %vm388_vm6, %v377_v63, %v3661_v61  ;;  %v466_v8 = vld [vmem:[#allocation3 + $0x68] sm:$0xff] }
  0xc9   :  { %402 = vst [vmem:[#allocation3 + $0x98] sm:$0xf0] %v390_v0  ;;  %v330_v1 = vpop.permute.xlu1 %329 }
  0xca   :  { %v344_v2 = vsel %vm343_vm5, %v330_v1, %v332_v57 }
  0xcb   :  { %356 = vst [vmem:[#allocation3 + $0x90] sm:$0xf] %v344_v2  ;;  %v286_v3 = vpop.permute.xlu0 %285 }
  0xcc   :  { %v300_v4 = vsel %vm299_vm4, %v286_v3, %v288_v54 }
  0xcd   :  { %312 = vst [vmem:[#allocation3 + $0x60] sm:$0xf0] %v300_v4  ;;  %v421_v5 = vpop.permute.xlu1 %420 }
  0xcf   :  { %v375_v6 = vpop.permute.xlu0 %374 }
  0xd0   :  { %v389_v7 = vsel %vm388_vm6, %v375_v6, %v377_v63  ;;  %v472_v9 = vld [vmem:[#allocation3 + $0x98] sm:$0xff] }
  0xd1   :  { %401 = vst [vmem:[#allocation3 + $0x90] sm:$0xf0] %v389_v7  ;;  %v419_v10 = vpop.permute.xlu1 %418  ;;  %v2821_v11 = vpack.c.bf16 %v472_v9, %v466_v8 }
  0xd2   :  { %v433_v12 = vsel %vm432_vm7, %v419_v10, %v421_v5 }
  0xd3   :  { %445 = vst [vmem:[#allocation3 + $0xc0] sm:$0xf] %v433_v12  ;;  %2822 = vmatprep.subr.bf16.mxu0 %v2821_v11  ;;  %v3669_v13 = vpop.permute.xlu0 %422 }
  0xd4   :  { %v434_v14 = vsel %vm432_vm7, %v421_v5, %v3669_v13  ;;  %v465_v20 = vld [vmem:[#allocation3 + $0x60] sm:$0xff] }
  0xd5   :  { %446 = vst [vmem:[#allocation3 + $0xc8] sm:$0xf] %v434_v14  ;;  %v3673_v15 = vpop.permute.xlu1 %96 }
  0xd7   :  { %v95_v16 = vpop.permute.xlu0 %94 }
  0xd8   :  { %v105_v18 = vsel %vm102_vm1, %v3637_v34, %v95_v16  ;;  %v106_v19 = vsel %vm102_vm1, %v95_v16, %v3673_v15  ;;  %v471_v21 = vld [vmem:[#allocation3 + $0x90] sm:$0xff] }
  0xd9   :  { %117 = vst [vmem:[#allocation3 + $0x10] sm:$0xf] %v105_v18  ;;  %118 = vst [vmem:[#allocation3 + $0x18] sm:$0xf] %v106_v19  ;;  %v3679_v22 = vpop.permute.xlu1 %141  ;;  %v2823_v23 = vpack.c.bf16 %v471_v21, %v465_v20 }
  0xda   :  { %v477_v30 = vld [vmem:[#allocation3 + $0xc0] sm:$0xf] }
  0xdb   :  { %2824 = vmatpush1.bf16.msra.mxu0 %v2823_v23  ;;  %v140_v24 = vpop.permute.xlu0 %139 }
  0xdc   :  { %v150_v25 = vsel %vm147_vm0, %v3633_v32, %v140_v24  ;;  %v151_v26 = vsel %vm147_vm0, %v140_v24, %v3679_v22  ;;  %v478_v27 = vld [vmem:[#allocation3 + $0xc8] sm:$0xf] }
  0xdd   :  { %162 = vst [vmem:[#allocation3 + $0x10] sm:$0xf0] %v150_v25  ;;  %163 = vst [vmem:[#allocation3 + $0x18] sm:$0xf0] %v151_v26  ;;  %2788 = vmatprep.subr.msk.mxu0 %vm502_vm8, %v478_v27  ;;  %v3686_v28 = vpop.permute.xlu1 %185 }
  0xdf   :  { %2789 = vmatpush1.msk.msra.mxu0 %vm502_vm8, %v477_v30  ;;  %v184_v31 = vpop.permute.xlu0 %183 }
  0xe0   :  { %v194_v32 = vsel %vm191_vm2, %v3641_v36, %v184_v31  ;;  %v195_v33 = vsel %vm191_vm2, %v184_v31, %v3686_v28  ;;  %2790 = vmatmul.mubr.msk.f32.vlgmr.msra.gmra.mrb[0].mxu0 %vm495_vm9, %v3688_v29 }
  0xe1   :  { %206 = vst [vmem:[#allocation3 + $0x40] sm:$0xf] %v194_v32  ;;  %207 = vst [vmem:[#allocation3 + $0x48] sm:$0xf] %v195_v33  ;;  %v3697_v34 = vpop.permute.xlu1 %230  ;;  %591 = vmatprep.mubr.f32.mxu0 %v3391_v17 }
  0xe3   :  { %v229_v37 = vpop.permute.xlu0 %228 }
  0xe4   :  { %v239_v38 = vsel %vm236_vm3, %v3645_v39, %v229_v37  ;;  %v240_v36 = vsel %vm236_vm3, %v229_v37, %v3697_v34  ;;  %2791 = vmatmul.mubr.msk.f32.gmra.mrb[2].mxu0 %vm495_vm9, %v3700_v35  ;;  %v456_v45 = vld [vmem:[#allocation3 + $0x18] sm:$0xff]  ;;  %v455_v49 = vld [vmem:[#allocation3 + $0x10] sm:$0xff] }
  0xe5   :  { %251 = vst [vmem:[#allocation3 + $0x40] sm:$0xf0] %v239_v38  ;;  %252 = vst [vmem:[#allocation3 + $0x48] sm:$0xf0] %v240_v36  ;;  %v3708_v40 = vpop.permute.xlu1 %293  ;;  %739 = vmatprep.mubr.f32.mxu0 %v3391_v17 }
  0xe7   :  { %v292_v41 = vpop.permute.xlu0 %291 }
  0xe8   :  { %v302_v42 = vsel %vm299_vm4, %v3653_v52, %v292_v41  ;;  %v303_v43 = vsel %vm299_vm4, %v292_v41, %v3708_v40 }
  0xe9   :  { %314 = vst [vmem:[#allocation3 + $0x70] sm:$0xf0] %v302_v42  ;;  %315 = vst [vmem:[#allocation3 + $0x78] sm:$0xf0] %v303_v43  ;;  %v3715_v39 = vpop.permute.xlu1 %337 }
  0xeb   :  { %v336_v44 = vpop.permute.xlu0 %335 }
  0xec   :  { %v346_v46 = vsel %vm343_vm5, %v3657_v56, %v336_v44  ;;  %v347_v47 = vsel %vm343_vm5, %v336_v44, %v3715_v39  ;;  %v462_v48 = vld [vmem:[#allocation3 + $0x48] sm:$0xff]  ;;  %v461_v50 = vld [vmem:[#allocation3 + $0x40] sm:$0xff] }
  0xed   :  { %358 = vst [vmem:[#allocation3 + $0xa0] sm:$0xf] %v346_v46  ;;  %359 = vst [vmem:[#allocation3 + $0xa8] sm:$0xf] %v347_v47  ;;  %v3721_v51 = vpop.permute.xlu1 %382  ;;  %v2825_v52 = vpack.c.bf16 %v462_v48, %v456_v45  ;;  %v2827_v53 = vpack.c.bf16 %v461_v50, %v455_v49 }
  0xef   :  { %2826 = vmatprep.subr.bf16.mxu1 %v2825_v52  ;;  %v381_v54 = vpop.permute.xlu0 %380 }
  0xf0   :  { %v391_v55 = vsel %vm388_vm6, %v3661_v61, %v381_v54  ;;  %v392_v56 = vsel %vm388_vm6, %v381_v54, %v3721_v51  ;;  %2828 = vmatpush1.bf16.msra.mxu1 %v2827_v53  ;;  %v468_v61 = vld [vmem:[#allocation3 + $0x78] sm:$0xff]  ;;  %v467_v3 = vld [vmem:[#allocation3 + $0x70] sm:$0xff]  ;;  %v791_v54 = vlaneseq }
  0xf1   :  { %403 = vst [vmem:[#allocation3 + $0xa0] sm:$0xf0] %v391_v55  ;;  %404 = vst [vmem:[#allocation3 + $0xa8] sm:$0xf0] %v392_v56  ;;  %v3727_v57 = vpop.permute.xlu1 %426  ;;  %v76_v56 = vld [vmem:[%s4642_s8] sm:$0x3f] }
  0xf2   :  { %v792_v55 = vshrl.u32 %v791_v54, 7 }
  0xf3   :  { %v425_v58 = vpop.permute.xlu0 %424 }
  0xf4   :  { %v435_v59 = vsel %vm432_vm7, %v3669_v13, %v425_v58  ;;  %v436_v60 = vsel %vm432_vm7, %v425_v58, %v3727_v57 }
  0xf5   :  { %447 = vst [vmem:[#allocation3 + $0xd0] sm:$0xf] %v435_v59  ;;  %448 = vst [vmem:[#allocation3 + $0xd8] sm:$0xf] %v436_v60  ;;  %v101_v62 = vpop.permute.xlu1 %100  ;;  %v793_v60 = vsub.s32 0, %v792_v55 }
  0xf7   :  { %v99_v63 = vpop.permute.xlu0 %98 }
  0xf8   :  { %v107_v0 = vsel %vm102_vm1, %v3673_v15, %v99_v63  ;;  %v108_v1 = vsel %vm102_vm1, %v99_v63, %v101_v62  ;;  %v474_v2 = vld [vmem:[#allocation3 + $0xa8] sm:$0xff]  ;;  %v473_v4 = vld [vmem:[#allocation3 + $0xa0] sm:$0xff]  ;;  %v797_v62 = vsub.s32 1, %v792_v55 }
  0xf9   :  { %119 = vst [vmem:[#allocation3 + $0x20] sm:$0xf] %v107_v0  ;;  %120 = vst [vmem:[#allocation3 + $0x28] sm:$0xf] %v108_v1  ;;  %v146_v5 = vpop.permute.xlu1 %145  ;;  %v2829_v6 = vpack.c.bf16 %v474_v2, %v468_v61  ;;  %v2831_v7 = vpack.c.bf16 %v473_v4, %v467_v3  ;;  %v3788_v61 = vstv %s764_s23  ;;  %v3792_v3 = vrot.slane %v76_v56, %v793_v60 }
  0xfb   :  { %2830 = vmatprep.subr.bf16.mxu1 %v2829_v6  ;;  %v144_v8 = vpop.permute.xlu0 %143  ;;  %v3797_v6 = vrot.slane %v76_v56, %v797_v62 }
  0xfc   :  { %v152_v9 = vsel %vm147_vm0, %v3679_v22, %v144_v8  ;;  %v153_v10 = vsel %vm147_vm0, %v144_v8, %v146_v5  ;;  %2832 = vmatpush1.bf16.msra.mxu1 %v2831_v7  ;;  %v480_v11 = vld [vmem:[#allocation3 + $0xd8] sm:$0xf]  ;;  %v479_v14 = vld [vmem:[#allocation3 + $0xd0] sm:$0xf] }
  0xfd   :  { %164 = vst [vmem:[#allocation3 + $0x20] sm:$0xf0] %v152_v9  ;;  %165 = vst [vmem:[#allocation3 + $0x28] sm:$0xf0] %v153_v10  ;;  %v190_v12 = vpop.permute.xlu1 %189  ;;  %2792 = vmatprep.subr.msk.mxu1 %vm502_vm8, %v480_v11 }
  0xff   :  { %v188_v13 = vpop.permute.xlu0 %187 }
 0x100   :  { %v196_v15 = vsel %vm191_vm2, %v3686_v28, %v188_v13  ;;  %v197_v16 = vsel %vm191_vm2, %v188_v13, %v190_v12  ;;  %2793 = vmatpush1.msk.msra.mxu1 %vm502_vm8, %v479_v14 }
 0x101   :  { %208 = vst [vmem:[#allocation3 + $0x50] sm:$0xf] %v196_v15  ;;  %209 = vst [vmem:[#allocation3 + $0x58] sm:$0xf] %v197_v16  ;;  %2794 = vmatmul.mubr.msk.f32.vlgmr.msra.gmra.mrb[0].mxu1 %vm495_vm9, %v3688_v29  ;;  %v235_v18 = vpop.permute.xlu1 %234 }
 0x102   :  { %668 = vmatprep.mubr.f32.mxu1 %v3391_v17 }
 0x103   :  { %v233_v19 = vpop.permute.xlu0 %232 }
 0x104   :  { %v241_v20 = vsel %vm236_vm3, %v3697_v34, %v233_v19  ;;  %v242_v21 = vsel %vm236_vm3, %v233_v19, %v235_v18  ;;  %v458_v27 = vld [vmem:[#allocation3 + $0x28] sm:$0xff]  ;;  %v457_v33 = vld [vmem:[#allocation3 + $0x20] sm:$0xff] }
 0x105   :  { %253 = vst [vmem:[#allocation3 + $0x50] sm:$0xf0] %v241_v20  ;;  %254 = vst [vmem:[#allocation3 + $0x58] sm:$0xf0] %v242_v21  ;;  %2795 = vmatmul.mubr.msk.f32.gmra.mrb[2].mxu1 %vm495_vm9, %v3700_v35  ;;  %v298_v22 = vpop.permute.xlu1 %297 }
 0x107   :  { %v296_v23 = vpop.permute.xlu0 %295 }
 0x108   :  { %v304_v24 = vsel %vm299_vm4, %v3708_v40, %v296_v23  ;;  %v305_v25 = vsel %vm299_vm4, %v296_v23, %v298_v22 }
 0x109   :  { %316 = vst [vmem:[#allocation3 + $0x80] sm:$0xf0] %v304_v24  ;;  %317 = vst [vmem:[#allocation3 + $0x88] sm:$0xf0] %v305_v25  ;;  %v342_v26 = vpop.permute.xlu1 %341 }
 0x10b   :  { %v340_v28 = vpop.permute.xlu0 %339 }
 0x10c   :  { %v348_v30 = vsel %vm343_vm5, %v3715_v39, %v340_v28  ;;  %v349_v31 = vsel %vm343_vm5, %v340_v28, %v342_v26  ;;  %v464_v32 = vld [vmem:[#allocation3 + $0x58] sm:$0xff]  ;;  %v463_v34 = vld [vmem:[#allocation3 + $0x50] sm:$0xff]  ;;  %v801_v28 = vsub.s32 2, %v792_v55 }
 0x10d   :  { %360 = vst [vmem:[#allocation3 + $0xb0] sm:$0xf] %v348_v30  ;;  %361 = vst [vmem:[#allocation3 + $0xb8] sm:$0xf] %v349_v31  ;;  %v387_v37 = vpop.permute.xlu1 %386  ;;  %v2833_v38 = vpack.c.bf16 %v464_v32, %v458_v27  ;;  %v2835_v36 = vpack.c.bf16 %v463_v34, %v457_v33  ;;  %v805_v30 = vsub.s32 3, %v792_v55 }
 0x10e   :  { %v3837_v34 = vrot.slane %v76_v56, %v801_v28 }
 0x10f   :  { %2834 = vmatprep.subr.bf16.mxu0 %v2833_v38  ;;  %v385_v40 = vpop.permute.xlu0 %384 }
 0x110   :  { %v393_v41 = vsel %vm388_vm6, %v3721_v51, %v385_v40  ;;  %v394_v42 = vsel %vm388_vm6, %v385_v40, %v387_v37  ;;  %2836 = vmatpush1.bf16.msra.mxu0 %v2835_v36  ;;  %v470_v46 = vld [vmem:[#allocation3 + $0x88] sm:$0xff]  ;;  %v469_v48 = vld [vmem:[#allocation3 + $0x80] sm:$0xff]  ;;  %v3841_v36 = vrot.slane %v76_v56, %v805_v30 }
 0x111   :  { %405 = vst [vmem:[#allocation3 + $0xb0] sm:$0xf0] %v393_v41  ;;  %406 = vst [vmem:[#allocation3 + $0xb8] sm:$0xf0] %v394_v42  ;;  %v431_v43 = vpop.permute.xlu1 %430 }
 0x112   :  { %4662 = vst [vmem:[#allocation19_spill] sm:$0xff] %v3841_v36 }
 0x113   :  { %v429_v39 = vpop.permute.xlu0 %428 }
 0x114   :  { %v437_v44 = vsel %vm432_vm7, %v3727_v57, %v429_v39  ;;  %v438_v45 = vsel %vm432_vm7, %v429_v39, %v431_v43 }
 0x115   :  { %449 = vst [vmem:[#allocation3 + $0xe0] sm:$0xf] %v437_v44  ;;  %450 = vst [vmem:[#allocation3 + $0xe8] sm:$0xf] %v438_v45 }
 0x118   :  { %v476_v47 = vld [vmem:[#allocation3 + $0xb8] sm:$0xff]  ;;  %v475_v49 = vld [vmem:[#allocation3 + $0xb0] sm:$0xff] }
 0x119   :  { %v2837_v50 = vpack.c.bf16 %v476_v47, %v470_v46  ;;  %v2839_v51 = vpack.c.bf16 %v475_v49, %v469_v48 }
 0x11b   :  { %2838 = vmatprep.subr.bf16.mxu0 %v2837_v50 }
 0x11c   :  { %2840 = vmatpush1.bf16.msra.mxu0 %v2839_v51  ;;  %v482_v52 = vld [vmem:[#allocation3 + $0xe8] sm:$0xf]  ;;  %v481_v53 = vld [vmem:[#allocation3 + $0xe0] sm:$0xf] }
 0x11d   :  { %2796 = vmatprep.subr.msk.mxu0 %vm502_vm8, %v482_v52 }
 0x120   :  { %2797 = vmatpush1.msk.msra.mxu0 %vm502_vm8, %v481_v53 }
 0x121   :  { %2798 = vmatmul.mubr.msk.f32.vlgmr.msra.gmra.mrb[4].mxu0 %vm495_vm9, %v3688_v29  ;;  %v809_v29 = vsub.s32 4, %v792_v55 }
 0x122   :  { %745 = vmatprep.mubr.f32.mxu0 %v3391_v17  ;;  %v3794_v4 = vpop.permute.xlu1 %492 }
 0x123   :  { %v3782_v57 = vrot.slane %v76_v56, %v809_v29 }
 0x124   :  { %v3786_v59 = vpop.permute.xlu0 %487 }
 0x125   :  { %2799 = vmatmul.mubr.msk.f32.gmra.mrb[6].mxu0 %vm495_vm9, %v3700_v35  ;;  %v813_v35 = vsub.s32 5, %v792_v55  ;;  %4660 = vst [vmem:[#allocation17_spill] sm:$0xff] %v3782_v57 }
 0x127   :  { %v3784_v58 = vrot.slane %v76_v56, %v813_v35 }
 0x129   :  { %4661 = vst [vmem:[#allocation18_spill] sm:$0xff] %v3784_v58 }
 0x1b3   :  { %v587_v63 = vpop.f32.mrb[0].mxu0 }
 0x1b4   :  { %v588_v0 = vadd.f32 %v587_v63, %v3786_v59  ;;  %v589_v1 = vpop.f32.mrb[1].mxu0 }
 0x1b5   :  { %v590_v2 = vadd.f32 %v589_v1, %v3786_v59 }
 0x1b6   :  { %vm752_vm10 = vcmp.gt.f32.partialorder %v588_v0, 0.0  ;;  %v766_v5 = vmul.f32 %v3788_v61, %v588_v0 }
 0x1b7   :  { %vm753_vm11 = vcmp.gt.f32.partialorder %v590_v2, 0.0  ;;  %v767_v7 = vmul.f32 %v3788_v61, %v590_v2  ;;  %v593_v8 = vpop.f32.mrb[2].mxu0 }
 0x1b8   :  { %v778_v9 = vsel %vm752_vm10, %v588_v0, %v766_v5  ;;  %v594_v10 = vadd.f32 %v593_v8, %v3794_v4  ;;  %v595_v11 = vpop.f32.mrb[3].mxu0 }
 0x1b9   :  { %v779_v12 = vsel %vm753_vm11, %v590_v2, %v767_v7  ;;  %v3802_v13 = vmul.f32 %v3792_v3, %v778_v9  ;;  %v596_v14 = vadd.f32 %v595_v11, %v3794_v4 }
 0x1ba   :  { %v3806_v15 = vmul.f32 %v3797_v6, %v779_v12  ;;  %vm758_vm12 = vcmp.gt.f32.partialorder %v594_v10, 0.0  ;;  %v772_v16 = vmul.f32 %v3788_v61, %v594_v10 }
 0x1bb   :  { %833 = vst [vmem:[#allocation2 + $0x8] sm:$0xff] %v3802_v13  ;;  %vm759_vm13 = vcmp.gt.f32.partialorder %v596_v14, 0.0  ;;  %v773_v18 = vmul.f32 %v3788_v61, %v596_v14 }
 0x1bc   :  { %834 = vst [vmem:[#allocation2 + $0x10] sm:$0xff] %v3806_v15  ;;  %v784_v19 = vsel %vm758_vm12, %v594_v10, %v772_v16  ;;  %v3018_v20 = vpack.i.bf16 %v3806_v15, %v3802_v13 }
 0x1bd   :  { %v3815_v21 = vmul.f32 %v3792_v3, %v784_v19  ;;  %v785_v22 = vsel %vm759_vm13, %v596_v14, %v773_v18 }
 0x1be   :  { %v3818_v23 = vmul.f32 %v3797_v6, %v785_v22  ;;  %3019 = vrot.lane.b32.xlu0 %v3018_v20, %s3383_s3  ;;  %3014 = vrot.lane.b32.xlu1 %v3018_v20, %s3384_s10 }
 0x1bf   :  { %839 = vst [vmem:[#allocation2 + $0x48] sm:$0xff] %v3815_v21  ;;  %v3078_v24 = vpack.i.bf16 %v3815_v21, %v3802_v13 }
 0x1c0   :  { %840 = vst [vmem:[#allocation2 + $0x50] sm:$0xff] %v3818_v23  ;;  %v3830_v26 = vpack.i.bf16 %v3818_v23, %v3815_v21 }
 0x1c2   :  { %3029 = vrot.lane.b32.xlu0 %v3018_v20, %s3386_s12  ;;  %3024 = vrot.lane.b32.xlu1 %v3018_v20, %s3385_s11 }
 0x1d4   :  { %v664_v31 = vpop.f32.mrb[0].mxu1 }
 0x1d5   :  { %v665_v32 = vadd.f32 %v664_v31, %v3786_v59  ;;  %v666_v33 = vpop.f32.mrb[1].mxu1 }
 0x1d6   :  { %v667_v37 = vadd.f32 %v666_v33, %v3786_v59 }
 0x1d7   :  { %vm754_vm14 = vcmp.gt.f32.partialorder %v665_v32, 0.0  ;;  %v768_v38 = vmul.f32 %v3788_v61, %v665_v32 }
 0x1d8   :  { %vm755_vm15 = vcmp.gt.f32.partialorder %v667_v37, 0.0  ;;  %v769_v40 = vmul.f32 %v3788_v61, %v667_v37  ;;  %v670_v41 = vpop.f32.mrb[2].mxu1 }
 0x1d9   :  { %v780_v42 = vsel %vm754_vm14, %v665_v32, %v768_v38  ;;  %v671_v43 = vadd.f32 %v670_v41, %v3794_v4  ;;  %v672_v39 = vpop.f32.mrb[3].mxu1  ;;  %v3969_v38 = vpop.permute.xlu0 %2999 }
 0x1da   :  { %v3846_v44 = vmul.f32 %v3837_v34, %v780_v42  ;;  %v781_v45 = vsel %vm755_vm15, %v667_v37, %v769_v40  ;;  %v673_v46 = vadd.f32 %v672_v39, %v3794_v4  ;;  %v2995_v40 = vpop.permute.xlu1 %2994 }
 0x1db   :  { %v3850_v47 = vmul.f32 %v3841_v36, %v781_v45  ;;  %vm760_vm10 = vcmp.gt.f32.partialorder %v671_v43, 0.0  ;;  %v774_v48 = vmul.f32 %v3788_v61, %v671_v43 }
 0x1dc   :  { %835 = vst [vmem:[#allocation2 + $0x18] sm:$0xff] %v3846_v44  ;;  %vm761_vm11 = vcmp.gt.f32.partialorder %v673_v46, 0.0  ;;  %v775_v49 = vmul.f32 %v3788_v61, %v673_v46  ;;  %v3038_v50 = vpack.i.bf16 %v3846_v44, %v3806_v15 }
 0x1dd   :  { %836 = vst [vmem:[#allocation2 + $0x20] sm:$0xff] %v3850_v47  ;;  %v786_v51 = vsel %vm760_vm10, %v671_v43, %v774_v48  ;;  %v3053_v52 = vpack.i.bf16 %v3850_v47, %v3846_v44  ;;  %vm1722_vm10 = vcmask 130048   ;;  %v3976_v41 = vpop.permute.xlu0 %3009 }
 0x1de   :  { %v3861_v53 = vmul.f32 %v3837_v34, %v786_v51  ;;  %v787_v54 = vsel %vm761_vm11, %v673_v46, %v775_v49  ;;  %3039 = vrot.lane.b32.xlu0 %v3038_v50, %s3388_s14  ;;  %3034 = vrot.lane.b32.xlu1 %v3038_v50, %s3387_s13  ;;  %v3978_v42 = vpop.permute.xlu1 %3004 }
 0x1df   :  { %v3866_v55 = vmul.f32 %v3841_v36, %v787_v54 }
 0x1e0   :  { %841 = vst [vmem:[#allocation2 + $0x58] sm:$0xff] %v3861_v53  ;;  %v3113_v29 = vpack.i.bf16 %v3861_v53, %v3818_v23 }
 0x1e1   :  { %842 = vst [vmem:[#allocation2 + $0x60] sm:$0xff] %v3866_v55  ;;  %v3123_v35 = vpack.i.bf16 %v3866_v55, %v3861_v53 }
 0x1e2   :  { %3054 = vrot.lane.b32.xlu0 %v3053_v52, %s3383_s3  ;;  %3044 = vrot.lane.b32.xlu1 %v3053_v52, %s3384_s10 }
 0x1e6   :  { %3059 = vrot.lane.b32.xlu0 %v3038_v50, %s3390_s16  ;;  %3049 = vrot.lane.b32.xlu1 %v3038_v50, %s3389_s15 }
 0x1ea   :  { %3079 = vrot.lane.b32.xlu0 %v3078_v24, %s3388_s14  ;;  %3064 = vrot.lane.b32.xlu1 %v3053_v52, %s3385_s11 }
 0x1ee   :  { %3089 = vrot.lane.b32.xlu0 %v3078_v24, %s3390_s16  ;;  %3069 = vrot.lane.b32.xlu1 %v3053_v52, %s3386_s12 }
 0x1f2   :  { %3094 = vrot.lane.b32.xlu0 %v3830_v26, %s3384_s10  ;;  %3074 = vrot.lane.b32.xlu1 %v3078_v24, %s3387_s13 }
 0x1f4   :  { %v741_v62 = vpop.f32.mrb[4].mxu0 }
 0x1f5   :  { %v742_v63 = vadd.f32 %v741_v62, %v3786_v59  ;;  %v743_v0 = vpop.f32.mrb[5].mxu0 }
 0x1f6   :  { %v744_v1 = vadd.f32 %v743_v0, %v3786_v59  ;;  %3104 = vrot.lane.b32.xlu0 %v3830_v26, %s3385_s11  ;;  %3084 = vrot.lane.b32.xlu1 %v3078_v24, %s3389_s15  ;;  %v2996_v0 = vunpack.i.l.bf16 %v2995_v40 }
 0x1f7   :  { %vm756_vm12 = vcmp.gt.f32.partialorder %v742_v63, 0.0  ;;  %v770_v2 = vmul.f32 %v3788_v61, %v742_v63 }
 0x1f8   :  { %vm757_vm13 = vcmp.gt.f32.partialorder %v744_v1, 0.0  ;;  %v771_v5 = vmul.f32 %v3788_v61, %v744_v1  ;;  %v747_v7 = vpop.f32.mrb[6].mxu0 }
 0x1f9   :  { %v782_v8 = vsel %vm756_vm12, %v742_v63, %v770_v2  ;;  %v748_v9 = vadd.f32 %v747_v7, %v3794_v4  ;;  %v749_v10 = vpop.f32.mrb[7].mxu0 }
 0x1fa   :  { %v825_v11 = vmul.f32 %v3782_v57, %v782_v8  ;;  %v783_v12 = vsel %vm757_vm13, %v744_v1, %v771_v5  ;;  %v750_v59 = vadd.f32 %v749_v10, %v3794_v4  ;;  %3114 = vrot.lane.b32.xlu0 %v3113_v29, %s3387_s13  ;;  %3099 = vrot.lane.b32.xlu1 %v3830_v26, %s3383_s3  ;;  %v2997_v8 = vunpack.i.h.bf16 %v2995_v40 }
 0x1fb   :  { %v3903_v14 = vmul.f32 %v3784_v58, %v783_v12  ;;  %vm762_vm14 = vcmp.gt.f32.partialorder %v748_v9, 0.0  ;;  %v776_v16 = vmul.f32 %v3788_v61, %v748_v9  ;;  %v3001_v12 = vunpack.i.l.bf16 %v3969_v38 }
 0x1fc   :  { %837 = vst [vmem:[#allocation2 + $0x28] sm:$0xff] %v825_v11  ;;  %vm763_vm15 = vcmp.gt.f32.partialorder %v750_v59, 0.0  ;;  %v777_v18 = vmul.f32 %v3788_v61, %v750_v59  ;;  %v3153_v19 = vpack.i.bf16 %v825_v11, %v3850_v47  ;;  %v3006_v40 = vunpack.i.l.bf16 %v3978_v42 }
 0x1fd   :  { %838 = vst [vmem:[#allocation2 + $0x30] sm:$0xff] %v3903_v14  ;;  %v788_v4 = vsel %vm762_vm14, %v748_v9, %v776_v16  ;;  %v3168_v20 = vpack.i.bf16 %v3903_v14, %v825_v11  ;;  %v3193_v37 = vpack.i.bf16 %v3391_v17, %v3903_v14  ;;  %v3002_v11 = vunpack.i.h.bf16 %v3969_v38 }
 0x1fe   :  { %v3911_v22 = vmul.f32 %v3782_v57, %v788_v4  ;;  %v789_v24 = vsel %vm763_vm15, %v750_v59, %v777_v18  ;;  %3124 = vrot.lane.b32.xlu0 %v3123_v35, %s3384_s10  ;;  %3109 = vrot.lane.b32.xlu1 %v3830_v26, %s3386_s12  ;;  %v3935_v26 = vld [vmem:[#allocation10] sm:$0xff]  ;;  %v3011_v59 = vunpack.i.l.bf16 %v3976_v41 }
 0x1ff   :  { %v3917_v28 = vmul.f32 %v3784_v58, %v789_v24  ;;  %v3941_v32 = vcombine.high %v3935_v26, %v3935_v26 }
 0x200   :  { %843 = vst [vmem:[#allocation2 + $0x68] sm:$0xff] %v3911_v22  ;;  %v3198_v61 = vpack.i.bf16 %v3911_v22, %v3866_v55 }
 0x201   :  { %844 = vst [vmem:[#allocation2 + $0x70] sm:$0xff] %v3917_v28  ;;  %v3213_v30 = vpack.i.bf16 %v3917_v28, %v3911_v22  ;;  %2800 = vmatprep.mubr.msk.f32.mxu1 %vm1722_vm10, %v3941_v32  ;;  %2801 = vmatprep.mubr.msk.f32.mxu0 %vm1722_vm10, %v3941_v32  ;;  %v3253_v33 = vpack.i.bf16 %v3391_v17, %v3917_v28  ;;  %v1714_v17 = vld [vmem:[%s4640_s6] sm:$0xf]  ;;  %s2803_s6 = sld [smem:[#allocation5 + $0x1]] }
 0x202   :  { %3129 = vrot.lane.b32.xlu0 %v3113_v29, %s3389_s15  ;;  %3119 = vrot.lane.b32.xlu1 %v3113_v29, %s3388_s14 }
 0x206   :  { %3144 = vrot.lane.b32.xlu0 %v3123_v35, %s3385_s11  ;;  %3134 = vrot.lane.b32.xlu1 %v3123_v35, %s3383_s3 }
 0x20a   :  { %3149 = vrot.lane.b32.xlu0 %v3123_v35, %s3386_s12  ;;  %3139 = vrot.lane.b32.xlu1 %v3113_v29, %s3390_s16 }
 0x20e   :  { %3199 = vrot.lane.b32.xlu0 %v3198_v61, %s3387_s13  ;;  %3154 = vrot.lane.b32.xlu1 %v3153_v19, %s3387_s13 }
 0x212   :  { %3204 = vrot.lane.b32.xlu0 %v3198_v61, %s3388_s14  ;;  %3159 = vrot.lane.b32.xlu1 %v3153_v19, %s3388_s14 }
 0x216   :  { %3209 = vrot.lane.b32.xlu0 %v3198_v61, %s3389_s15  ;;  %3164 = vrot.lane.b32.xlu1 %v3153_v19, %s3389_s15 }
 0x21a   :  { %3214 = vrot.lane.b32.xlu0 %v3213_v30, %s3384_s10  ;;  %3169 = vrot.lane.b32.xlu1 %v3168_v20, %s3384_s10 }
 0x21e   :  { %3219 = vrot.lane.b32.xlu0 %v3213_v30, %s3383_s3  ;;  %3174 = vrot.lane.b32.xlu1 %v3168_v20, %s3383_s3 }
 0x222   :  { %3224 = vrot.lane.b32.xlu0 %v3213_v30, %s3385_s11  ;;  %3179 = vrot.lane.b32.xlu1 %v3168_v20, %s3385_s11 }
 0x226   :  { %3229 = vrot.lane.b32.xlu0 %v3213_v30, %s3386_s12  ;;  %3184 = vrot.lane.b32.xlu1 %v3168_v20, %s3386_s12 }
 0x22a   :  { %3234 = vrot.lane.b32.xlu0 %v3198_v61, %s3390_s16  ;;  %3189 = vrot.lane.b32.xlu1 %v3153_v19, %s3390_s16 }
 0x22e   :  { %3254 = vrot.lane.b32.xlu0 %v3253_v33, %s3387_s13  ;;  %3194 = vrot.lane.b32.xlu1 %v3193_v37, %s3387_s13 }
 0x230   :  { %v3980_v43 = vpop.permute.xlu0 %3019  ;;  %v3982_v39 = vpop.permute.xlu1 %3014 }
 0x231   :  { %v3017_v1 = vunpack.i.h.bf16 %v3982_v39  ;;  %v3016_v2 = vunpack.i.l.bf16 %v3982_v39  ;;  %v4649_v16 = vunpack.i.h.bf16 %v3980_v43  ;;  %v3021_v24 = vunpack.i.l.bf16 %v3980_v43 }
 0x232   :  { %3259 = vrot.lane.b32.xlu0 %v3253_v33, %s3388_s14  ;;  %3239 = vrot.lane.b32.xlu1 %v3193_v37, %s3388_s14 }
 0x233   :  { %v901_v18 = vsel %vm102_vm1, %v2996_v0, %v3016_v2  ;;  %v902_v4 = vsel %vm102_vm1, %v3016_v2, %v3017_v1  ;;  %v993_v56 = vsel %vm147_vm0, %v3001_v12, %v3021_v24 }
 0x234   :  { %v3984_v45 = vpop.permute.xlu0 %3029  ;;  %v3986_v46 = vpop.permute.xlu1 %3024 }
 0x235   :  { %v3031_v61 = vunpack.i.l.bf16 %v3984_v45  ;;  %v4645_v39 = vunpack.i.h.bf16 %v3986_v46  ;;  %v3026_v0 = vunpack.i.l.bf16 %v3986_v46 }
 0x236   :  { %3264 = vrot.lane.b32.xlu0 %v3253_v33, %s3389_s15  ;;  %3244 = vrot.lane.b32.xlu1 %v3193_v37, %s3389_s15 }
 0x237   :  { %v4046_v60 = vsel %vm236_vm3, %v3011_v59, %v3031_v61  ;;  %v1086_v12 = vsel %vm191_vm2, %v3026_v0, %v4645_v39 }
 0x23a   :  { %3269 = vrot.lane.b32.xlu0 %v3253_v33, %s3390_s16  ;;  %3249 = vrot.lane.b32.xlu1 %v3193_v37, %s3390_s16 }
 0x23e   :  { %1717 = vperm.xlu1 %2992, %v1714_v17   ;;  %v4646_v17 = vunpack.i.h.bf16 %v3984_v45 }
 0x250   :  { %v3988_v48 = vpop.permute.xlu0 %3039  ;;  %v3990_v49 = vpop.permute.xlu1 %3034 }
 0x251   :  { %v4651_v2 = vunpack.i.h.bf16 %v3988_v48 }
 0x254   :  { %v3992_v50 = vpop.permute.xlu0 %3054  ;;  %v3994_v51 = vpop.permute.xlu1 %3044 }
 0x255   :  { %v3046_v25 = vunpack.i.l.bf16 %v3994_v51 }
 0x257   :  { %v903_v59 = vsel %vm102_vm1, %v3017_v1, %v3046_v25 }
 0x258   :  { %v3996_v52 = vpop.permute.xlu0 %3059  ;;  %v3998_v54 = vpop.permute.xlu1 %3049 }
 0x25c   :  { %v4000_v29 = vpop.permute.xlu0 %3079  ;;  %v4002_v35 = vpop.permute.xlu1 %3064 }
 0x260   :  { %v4004_v62 = vpop.permute.xlu0 %3089  ;;  %v4006_v63 = vpop.permute.xlu1 %3069 }
 0x264   :  { %v4010_v5 = vpop.permute.xlu0 %3094  ;;  %v4012_v7 = vpop.permute.xlu1 %3074 }
 0x265   :  { %v4644_v9 = vunpack.i.h.bf16 %v4010_v5  ;;  %v3096_v10 = vunpack.i.l.bf16 %v4010_v5 }
 0x267   :  { %v907_v19 = vsel %vm102_vm1, %v2997_v8, %v3096_v10  ;;  %v908_v20 = vsel %vm102_vm1, %v3096_v10, %v4644_v9  ;;  %v4652_v8 = vunpack.i.l.bf16 %v3988_v48  ;;  %v4647_v10 = vunpack.i.h.bf16 %v3990_v49 }
 0x268   :  { %v2843_v30 = vpack.c.bf16 %v907_v19, %v901_v18  ;;  %v4028_v33 = vpop.permute.xlu0 %3104  ;;  %v4030_v37 = vpop.permute.xlu1 %3084  ;;  %v2841_v38 = vpack.c.bf16 %v908_v20, %v902_v4  ;;  %v4648_v18 = vunpack.i.l.bf16 %v3990_v49  ;;  %v3012_v19 = vunpack.i.h.bf16 %v3976_v41 }
 0x269   :  { %v3007_v4 = vunpack.i.h.bf16 %v3978_v42  ;;  %v3106_v31 = vunpack.i.l.bf16 %v4028_v33  ;;  %v994_v41 = vsel %vm147_vm0, %v3021_v24, %v4649_v16  ;;  %v1085_v42 = vsel %vm191_vm2, %v3006_v40, %v3026_v0 }
 0x26a   :  { %2842 = vmatprep.subr.bf16.mxu1 %v2841_v38  ;;  %v1178_v20 = vsel %vm236_vm3, %v3031_v61, %v4646_v17  ;;  %v4071_v24 = vsel %vm299_vm4, %v4648_v18, %v4647_v10  ;;  %v4078_v40 = vsel %vm343_vm5, %v4652_v8, %v4651_v2  ;;  %v4663_v17 = vunpack.i.h.bf16 %v4028_v33 }
 0x26b   :  { %2844 = vmatpush1.bf16.msra.mxu1 %v2843_v30  ;;  %v3056_v18 = vunpack.i.l.bf16 %v3992_v50  ;;  %v1091_v1 = vsel %vm191_vm2, %v3007_v4, %v3106_v31 }
 0x26c   :  { %v4049_v27 = vpop.permute.xlu0 %3114  ;;  %v4051_v9 = vpop.permute.xlu1 %3099  ;;  %v1092_v10 = vsel %vm191_vm2, %v3106_v31, %v4663_v17  ;;  %v4668_v31 = vunpack.i.h.bf16 %v3980_v43 }
 0x26d   :  { %v4653_v38 = vunpack.i.h.bf16 %v4051_v9  ;;  %v3101_v30 = vunpack.i.l.bf16 %v4051_v9 }
 0x26f   :  { %v999_v39 = vsel %vm147_vm0, %v3002_v11, %v3101_v30  ;;  %v1000_v61 = vsel %vm147_vm0, %v3101_v30, %v4653_v38 }
 0x270   :  { %v2847_v16 = vpack.c.bf16 %v999_v39, %v993_v56  ;;  %v4090_v58 = vpop.permute.xlu0 %3124  ;;  %v4092_v2 = vpop.permute.xlu1 %3109  ;;  %v2845_v8 = vpack.c.bf16 %v1000_v61, %v994_v41  ;;  %v2849_v56 = vpack.c.bf16 %v1092_v10, %v1086_v12  ;;  %v4664_v39 = vunpack.i.h.bf16 %v4010_v5 }
 0x271   :  { %v3126_v0 = vunpack.i.l.bf16 %v4090_v58  ;;  %v3111_v38 = vunpack.i.l.bf16 %v4092_v2  ;;  %v4665_v61 = vunpack.i.h.bf16 %v3994_v51  ;;  %v4666_v30 = vunpack.i.h.bf16 %v4090_v58 }
 0x272   :  { %2846 = vmatprep.subr.bf16.mxu1 %v2845_v8  ;;  %v4667_v17 = vunpack.i.h.bf16 %v4092_v2  ;;  %v995_v8 = vsel %vm147_vm0, %v4668_v31, %v3056_v18  ;;  %v3066_v5 = vunpack.i.l.bf16 %v4002_v35 }
 0x273   :  { %v909_v41 = vsel %vm102_vm1, %v4664_v39, %v3126_v0  ;;  %2848 = vmatpush1.bf16.msra.mxu1 %v2847_v16  ;;  %v904_v11 = vsel %vm102_vm1, %v3046_v25, %v4665_v61  ;;  %v910_v36 = vsel %vm102_vm1, %v3126_v0, %v4666_v30  ;;  %v2851_v0 = vpack.c.bf16 %v1091_v1, %v1085_v42 }
 0x274   :  { %v1184_v57 = vsel %vm236_vm3, %v3111_v38, %v4667_v17  ;;  %v2879_v10 = vpack.c.bf16 %v909_v41, %v903_v59  ;;  %v4117_v16 = vpop.permute.xlu0 %3129  ;;  %v4119_v4 = vpop.permute.xlu1 %3119  ;;  %2850 = vmatprep.subr.bf16.mxu1 %v2849_v56  ;;  %v2877_v25 = vpack.c.bf16 %v910_v36, %v904_v11  ;;  %v1183_v30 = vsel %vm236_vm3, %v3012_v19, %v3111_v38 }
 0x275   :  { %v4669_v17 = vunpack.i.h.bf16 %v3992_v50  ;;  %v3082_v61 = vunpack.i.h.bf16 %v4000_v29  ;;  %v2853_v59 = vpack.c.bf16 %v1184_v57, %v1178_v20  ;;  %v4670_v41 = vunpack.i.h.bf16 %v3998_v54 }
 0x276   :  { %2878 = vmatprep.subr.bf16.mxu0 %v2877_v25  ;;  %v4671_v56 = vunpack.i.l.bf16 %v3998_v54  ;;  %v4657_v38 = vunpack.i.h.bf16 %v4049_v27  ;;  %v4672_v11 = vunpack.i.h.bf16 %v3986_v46  ;;  %v2855_v20 = vpack.c.bf16 %v1183_v30, %v4046_v60 }
 0x277   :  { %v996_v43 = vsel %vm147_vm0, %v3056_v18, %v4669_v17  ;;  %v3116_v18 = vunpack.i.l.bf16 %v4049_v27  ;;  %2852 = vmatpush1.bf16.msra.mxu1 %v2851_v0  ;;  %2880 = vmatpush1.bf16.msra.mxu0 %v2879_v10  ;;  %v3121_v31 = vunpack.i.l.bf16 %v4119_v4  ;;  %v3071_v60 = vunpack.i.l.bf16 %v4006_v63 }
 0x278   :  { %v4133_v36 = vsel %vm388_vm6, %v4671_v56, %v4670_v41  ;;  %v1087_v57 = vsel %vm191_vm2, %v4672_v11, %v3066_v5  ;;  %v4145_v25 = vpop.permute.xlu0 %3144  ;;  %v4147_v17 = vpop.permute.xlu1 %3134  ;;  %2854 = vmatprep.subr.bf16.mxu1 %v2853_v59  ;;  %v3077_v30 = vunpack.i.h.bf16 %v4012_v7  ;;  %v3076_v11 = vunpack.i.l.bf16 %v4012_v7 }
 0x279   :  { %v4658_v41 = vunpack.i.h.bf16 %v4145_v25  ;;  %v3146_v0 = vunpack.i.l.bf16 %v4145_v25  ;;  %v4656_v10 = vunpack.i.h.bf16 %v4147_v17  ;;  %v3136_v46 = vunpack.i.l.bf16 %v4147_v17 }
 0x27a   :  { %v4673_v42 = vunpack.i.h.bf16 %v4051_v9  ;;  %v1300_v12 = vsel %vm299_vm4, %v3116_v18, %v4657_v38  ;;  %v1299_v1 = vsel %vm299_vm4, %v3077_v30, %v3116_v18  ;;  %v4676_v38 = vunpack.i.h.bf16 %v4028_v33 }
 0x27b   :  { %2856 = vmatpush1.bf16.msra.mxu1 %v2855_v20  ;;  %v1002_v39 = vsel %vm147_vm0, %v3136_v46, %v4656_v10  ;;  %v1094_v56 = vsel %vm191_vm2, %v3146_v0, %v4658_v41  ;;  %v4677_v30 = vunpack.i.h.bf16 %v4119_v4  ;;  %v4679_v33 = vunpack.i.h.bf16 %v4006_v63 }
 0x27c   :  { %v1001_v59 = vsel %vm147_vm0, %v4673_v42, %v3136_v46  ;;  %v4170_v19 = vpop.permute.xlu0 %3149  ;;  %v4172_v9 = vpop.permute.xlu1 %3139  ;;  %v4674_v42 = vpack.c.bf16 %v3818_v23, %v3806_v15  ;;  %v2881_v20 = vpack.c.bf16 %v1002_v39, %v996_v43  ;;  %v4675_v46 = vunpack.i.h.bf16 %v4002_v35 }
 0x27d   :  { %v2883_v7 = vpack.c.bf16 %v1001_v59, %v995_v8  ;;  %v1093_v41 = vsel %vm191_vm2, %v4676_v38, %v3146_v0  ;;  %v4659_v18 = vunpack.i.h.bf16 %v4170_v19  ;;  %v3151_v8 = vunpack.i.l.bf16 %v4170_v19 }
 0x27e   :  { %2858 = vmatprep.subr.bf16.mxu1 %v4674_v42  ;;  %v1088_v10 = vsel %vm191_vm2, %v3066_v5, %v4675_v46  ;;  %v1392_v59 = vsel %vm343_vm5, %v3121_v31, %v4677_v30  ;;  %v4678_v15 = vunpack.i.l.bf16 %v3990_v49  ;;  %2882 = vmatprep.subr.bf16.mxu0 %v2881_v20  ;;  %v2861_v43 = vpack.c.bf16 %v1300_v12, %v4071_v24 }
 0x27f   :  { %v2885_v5 = vpack.c.bf16 %v1094_v56, %v1088_v10  ;;  %v1180_v39 = vsel %vm236_vm3, %v3071_v60, %v4679_v33  ;;  %v3132_v0 = vunpack.i.h.bf16 %v4117_v16  ;;  %v3131_v42 = vunpack.i.l.bf16 %v4117_v16  ;;  %2884 = vmatpush1.bf16.msra.mxu0 %v2883_v7 }
 0x280   :  { %v1293_v23 = vsel %vm299_vm4, %v3076_v11, %v4678_v15  ;;  %v4680_v46 = vpack.c.bf16 %v3815_v21, %v3802_v13  ;;  %v1186_v11 = vsel %vm236_vm3, %v3151_v8, %v4659_v18  ;;  %v3091_v24 = vunpack.i.l.bf16 %v4004_v62  ;;  %v4205_v56 = vpop.permute.xlu0 %3199 }
 0x281   :  { %v2863_v38 = vpack.c.bf16 %v1299_v1, %v1293_v23  ;;  %v1391_v12 = vsel %vm343_vm5, %v3082_v61, %v3121_v31  ;;  %v2887_v10 = vpack.c.bf16 %v1093_v41, %v1087_v57  ;;  %v4207_v1 = vpop.permute.xlu1 %3154  ;;  %2886 = vmatprep.subr.bf16.mxu0 %v2885_v5  ;;  %v2865_v20 = vpack.c.bf16 %v1392_v59, %v4078_v40 }
 0x282   :  { %2860 = vmatpush1.bf16.msra.mxu1 %v4680_v46  ;;  %v4681_v13 = vunpack.i.h.bf16 %v4092_v2  ;;  %v3142_v7 = vunpack.i.h.bf16 %v4172_v9  ;;  %v3141_v30 = vunpack.i.l.bf16 %v4172_v9  ;;  %v2889_v15 = vpack.c.bf16 %v1186_v11, %v1180_v39 }
 0x283   :  { %2862 = vmatprep.subr.bf16.mxu1 %v2861_v43  ;;  %v3202_v61 = vunpack.i.h.bf16 %v4205_v56  ;;  %v3201_v57 = vunpack.i.l.bf16 %v4205_v56  ;;  %v3157_v31 = vunpack.i.h.bf16 %v4207_v1  ;;  %v3156_v41 = vunpack.i.l.bf16 %v4207_v1  ;;  %2888 = vmatpush1.bf16.msra.mxu0 %v2887_v10 }
 0x284   :  { %v1185_v21 = vsel %vm236_vm3, %v4681_v13, %v3151_v8  ;;  %v3087_v23 = vunpack.i.h.bf16 %v4030_v37  ;;  %v3086_v40 = vunpack.i.l.bf16 %v4030_v37  ;;  %v1484_v2 = vsel %vm388_vm6, %v3131_v42, %v3132_v0  ;;  %v4241_v13 = vpop.permute.xlu0 %3204  ;;  %2890 = vmatprep.subr.bf16.mxu0 %v2889_v15 }
 0x285   :  { %v4682_v8 = vunpack.i.h.bf16 %v3996_v52  ;;  %v4683_v59 = vunpack.i.l.bf16 %v3996_v52  ;;  %v4684_v5 = vunpack.i.l.bf16 %v3988_v48  ;;  %v4685_v33 = vunpack.i.l.bf16 %v4000_v29  ;;  %v4243_v18 = vpop.permute.xlu1 %3159 }
 0x286   :  { %2864 = vmatpush1.bf16.msra.mxu1 %v2863_v38  ;;  %v3092_v37 = vunpack.i.h.bf16 %v4004_v62  ;;  %v4687_v11 = vunpack.i.h.bf16 %v3984_v45  ;;  %v1483_v29 = vsel %vm388_vm6, %v3087_v23, %v3131_v42  ;;  %v3206_v62 = vunpack.i.l.bf16 %v4241_v13 }
 0x287   :  { %v1570_v43 = vsel %vm432_vm7, %v4683_v59, %v4682_v8  ;;  %v1385_v39 = vsel %vm343_vm5, %v4685_v33, %v4684_v5  ;;  %v4686_v38 = vmov %v4683_v59  ;;  %2866 = vmatprep.subr.bf16.mxu1 %v2865_v20  ;;  %v2869_v5 = vpack.c.bf16 %v1484_v2, %v4133_v36 }
 0x288   :  { %v1569_v46 = vsel %vm432_vm7, %v3091_v24, %v4686_v38  ;;  %v1179_v10 = vsel %vm236_vm3, %v4687_v11, %v3071_v60  ;;  %v2867_v8 = vpack.c.bf16 %v1391_v12, %v1385_v39  ;;  %v1576_v45 = vsel %vm432_vm7, %v3141_v30, %v3142_v7  ;;  %v4267_v39 = vpop.permute.xlu0 %3209 }
 0x289   :  { %v2891_v59 = vpack.c.bf16 %v1185_v21, %v1179_v10  ;;  %v1296_v60 = vsel %vm299_vm4, %v3156_v41, %v3157_v31  ;;  %v1302_v24 = vsel %vm299_vm4, %v3201_v57, %v3202_v61  ;;  %v4688_v42 = vunpack.i.l.bf16 %v3998_v54  ;;  %v4269_v38 = vpop.permute.xlu1 %3164 }
 0x28a   :  { %v3207_v20 = vunpack.i.h.bf16 %v4241_v13  ;;  %v3162_v36 = vunpack.i.h.bf16 %v4243_v18  ;;  %v3161_v21 = vunpack.i.l.bf16 %v4243_v18  ;;  %2868 = vmatpush1.bf16.msra.mxu1 %v2867_v8  ;;  %v1575_v23 = vsel %vm432_vm7, %v3092_v37, %v3141_v30 }
 0x28b   :  { %v1477_v12 = vsel %vm388_vm6, %v3086_v40, %v4688_v42  ;;  %2892 = vmatpush1.bf16.msra.mxu0 %v2891_v59  ;;  %v4689_v2 = vunpack.i.h.bf16 %v4049_v27  ;;  %2870 = vmatprep.subr.bf16.mxu1 %v2869_v5  ;;  %v4690_v40 = vpack.c.bf16 %v3866_v55, %v3850_v47  ;;  %v4691_v11 = vunpack.i.h.bf16 %v3990_v49 }
 0x28c   :  { %v2871_v15 = vpack.c.bf16 %v1483_v29, %v1477_v12  ;;  %v4692_v29 = vunpack.i.h.bf16 %v4119_v4  ;;  %v2873_v27 = vpack.c.bf16 %v1576_v45, %v1570_v43  ;;  %v2897_v37 = vpack.c.bf16 %v1302_v24, %v1296_v60  ;;  %v3215_v60 = vpop.permute.xlu0 %3214 }
 0x28d   :  { %v1301_v33 = vsel %vm299_vm4, %v4689_v2, %v3201_v57  ;;  %2894 = vmatprep.subr.bf16.mxu0 %v4690_v40  ;;  %v1295_v10 = vsel %vm299_vm4, %v4691_v11, %v3156_v41  ;;  %v3212_v57 = vunpack.i.h.bf16 %v4267_v39  ;;  %v3211_v8 = vunpack.i.l.bf16 %v4267_v39  ;;  %v3170_v24 = vpop.permute.xlu1 %3169 }
 0x28e   :  { %v1393_v30 = vsel %vm343_vm5, %v4692_v29, %v3206_v62  ;;  %v3167_v59 = vunpack.i.h.bf16 %v4269_v38  ;;  %v3166_v5 = vunpack.i.l.bf16 %v4269_v38  ;;  %v4693_v47 = vunpack.i.h.bf16 %v3988_v48  ;;  %2872 = vmatpush1.bf16.msra.mxu1 %v2871_v15 }
 0x28f   :  { %v4694_v49 = vpack.c.bf16 %v3861_v53, %v3846_v44  ;;  %v1388_v4 = vsel %vm343_vm5, %v3161_v21, %v3162_v36  ;;  %v1394_v41 = vsel %vm343_vm5, %v3206_v62, %v3207_v20  ;;  %v2875_v43 = vpack.c.bf16 %v1575_v23, %v1569_v46  ;;  %2874 = vmatprep.subr.bf16.mxu1 %v2873_v27 }
 0x290   :  { %v1387_v55 = vsel %vm343_vm5, %v4693_v47, %v3161_v21  ;;  %v2899_v45 = vpack.c.bf16 %v1301_v33, %v1295_v10  ;;  %v3217_v48 = vunpack.i.h.bf16 %v3215_v60  ;;  %v3216_v42 = vunpack.i.l.bf16 %v3215_v60 }
 0x291   :  { %2896 = vmatpush1.bf16.msra.mxu0 %v4694_v49  ;;  %v3172_v12 = vunpack.i.h.bf16 %v3170_v24  ;;  %v3171_v15 = vunpack.i.l.bf16 %v3170_v24  ;;  %v2903_v44 = vpack.c.bf16 %v1393_v30, %v1387_v55  ;;  %v2901_v53 = vpack.c.bf16 %v1394_v41, %v1388_v4  ;;  %v3175_v27 = vpop.permute.xlu1 %3174 }
 0x292   :  { %2898 = vmatprep.subr.bf16.mxu0 %v2897_v37  ;;  %v1480_v21 = vsel %vm388_vm6, %v3166_v5, %v3167_v59  ;;  %v1486_v62 = vsel %vm388_vm6, %v3211_v8, %v3212_v57  ;;  %v4695_v46 = vunpack.i.h.bf16 %v4090_v58  ;;  %v4696_v2 = vunpack.i.h.bf16 %v3994_v51  ;;  %2876 = vmatpush1.bf16.msra.mxu1 %v2875_v43  ;;  %v3220_v58 = vpop.permute.xlu0 %3219 }
 0x293   :  { %v906_v40 = vsel %vm102_vm1, %v3171_v15, %v3172_v12  ;;  %v1485_v11 = vsel %vm388_vm6, %v3132_v0, %v3211_v8  ;;  %v4697_v10 = vunpack.i.h.bf16 %v3998_v54  ;;  %v912_v51 = vsel %vm102_vm1, %v3216_v42, %v3217_v48 }
 0x294   :  { %v911_v23 = vsel %vm102_vm1, %v4695_v46, %v3216_v42  ;;  %v905_v33 = vsel %vm102_vm1, %v4696_v2, %v3171_v15  ;;  %v3222_v37 = vunpack.i.h.bf16 %v3220_v58  ;;  %v3221_v47 = vunpack.i.l.bf16 %v3220_v58 }
 0x295   :  { %2900 = vmatpush1.bf16.msra.mxu0 %v2899_v45  ;;  %v1479_v29 = vsel %vm388_vm6, %v4697_v10, %v3166_v5  ;;  %v2915_v30 = vpack.c.bf16 %v911_v23, %v905_v33  ;;  %v3177_v55 = vunpack.i.h.bf16 %v3175_v27  ;;  %v3176_v49 = vunpack.i.l.bf16 %v3175_v27  ;;  %1790 = vmatmul.mubr.f32.vlgmr.msra.gmra.mrb[4].mxu1 %v3935_v26  ;;  %v3180_v48 = vpop.permute.xlu1 %3179 }
 0x296   :  { %2902 = vmatprep.subr.bf16.mxu0 %v2901_v53  ;;  %v2913_v4 = vpack.c.bf16 %v912_v51, %v906_v40  ;;  %v2905_v16 = vpack.c.bf16 %v1486_v62, %v1480_v21  ;;  %v4698_v0 = vunpack.i.h.bf16 %v4147_v17  ;;  %v4699_v8 = vunpack.i.h.bf16 %v3992_v50  ;;  %v3225_v24 = vpop.permute.xlu0 %3224  ;;  %2802 = vmatprep.mubr.msk.f32.mxu1 %vm1722_vm10, %v3941_v32 }
 0x297   :  { %v998_v41 = vsel %vm147_vm0, %v3176_v49, %v3177_v55  ;;  %v1004_v43 = vsel %vm147_vm0, %v3221_v47, %v3222_v37  ;;  %v2907_v45 = vpack.c.bf16 %v1485_v11, %v1479_v29  ;;  %v3227_v17 = vunpack.i.h.bf16 %v3225_v24 }
 0x298   :  { %v1003_v54 = vsel %vm147_vm0, %v4698_v0, %v3221_v47  ;;  %v997_v5 = vsel %vm147_vm0, %v4699_v8, %v3176_v49  ;;  %2914 = vmatprep.subr.bf16.mxu1 %v2913_v4  ;;  %v2917_v42 = vpack.c.bf16 %v1004_v43, %v998_v41  ;;  %v3226_v12 = vunpack.i.l.bf16 %v3225_v24 }
 0x299   :  { %2904 = vmatpush1.bf16.msra.mxu0 %v2903_v44  ;;  %v2919_v60 = vpack.c.bf16 %v1003_v54, %v997_v5  ;;  %2916 = vmatpush1.bf16.msra.mxu1 %v2915_v30  ;;  %v3182_v15 = vunpack.i.h.bf16 %v3180_v48  ;;  %v3181_v53 = vunpack.i.l.bf16 %v3180_v48  ;;  %v4700_v50 = vunpack.i.h.bf16 %v4145_v25  ;;  %v3185_v40 = vpop.permute.xlu1 %3184 }
 0x29a   :  { %2906 = vmatprep.subr.bf16.mxu0 %v2905_v16  ;;  %2918 = vmatprep.subr.bf16.mxu1 %v2917_v42  ;;  %v4701_v21 = vunpack.i.h.bf16 %v4002_v35  ;;  %v1096_v23 = vsel %vm191_vm2, %v3226_v12, %v3227_v17  ;;  %v3230_v33 = vpop.permute.xlu0 %3229  ;;  %v3187_v29 = vunpack.i.h.bf16 %v3185_v40  ;;  %v3186_v25 = vunpack.i.l.bf16 %v3185_v40  ;;  %v4384_v40 = vld [vmem:[#allocation2] sm:$0xff] }
 0x29b   :  { %v1095_v44 = vsel %vm191_vm2, %v4700_v50, %v3226_v12  ;;  %v1090_v46 = vsel %vm191_vm2, %v3181_v53, %v3182_v15  ;;  %v3232_v32 = vunpack.i.h.bf16 %v3230_v33  ;;  %v3231_v10 = vunpack.i.l.bf16 %v3230_v33 }
 0x29c   :  { %v1089_v62 = vsel %vm191_vm2, %v4701_v21, %v3181_v53  ;;  %v2921_v11 = vpack.c.bf16 %v1096_v23, %v1090_v46  ;;  %v4702_v30 = vunpack.i.h.bf16 %v4170_v19  ;;  %v4703_v58 = vunpack.i.h.bf16 %v4006_v63 }
 0x29d   :  { %2908 = vmatpush1.bf16.msra.mxu0 %v2907_v45  ;;  %v2923_v2 = vpack.c.bf16 %v1095_v44, %v1089_v62  ;;  %2920 = vmatpush1.bf16.msra.mxu1 %v2919_v60  ;;  %v1182_v51 = vsel %vm236_vm3, %v3186_v25, %v3187_v29  ;;  %v1188_v37 = vsel %vm236_vm3, %v3231_v10, %v3232_v32  ;;  %v4345_v49 = vpop.permute.xlu1 %3189  ;;  %v4704_v8 = vunpack.i.h.bf16 %v3996_v52  ;;  %v1217_v45 = vld [vmem:[#allocation2 + $0x28] sm:$0xff] }
 0x29e   :  { %2922 = vmatprep.subr.bf16.mxu1 %v2921_v11  ;;  %v1187_v35 = vsel %vm236_vm3, %v4702_v30, %v3231_v10  ;;  %v1181_v27 = vsel %vm236_vm3, %v4703_v58, %v3186_v25  ;;  %v4343_v55 = vpop.permute.xlu0 %3234  ;;  %v2925_v4 = vpack.c.bf16 %v1188_v37, %v1182_v51  ;;  %v3192_v0 = vunpack.i.h.bf16 %v4345_v49 }
 0x29f   :  { %v2927_v47 = vpack.c.bf16 %v1187_v35, %v1181_v27  ;;  %v3237_v16 = vunpack.i.h.bf16 %v4343_v55  ;;  %v3236_v19 = vunpack.i.l.bf16 %v4343_v55  ;;  %v3191_v63 = vunpack.i.l.bf16 %v4345_v49  ;;  %v2087_v55 = vld [vmem:[#allocation2 + $0x80] sm:$0xf] }
 0x2a0   :  { %v4705_v12 = vpack.c.bf16 %v3917_v28, %v3903_v14  ;;  %v2931_v15 = vpack.c.bf16 %v3911_v22, %v1217_v45  ;;  %v2034_v49 = vld [vmem:[#allocation2 + $0x80] sm:$0xf]  ;;  %v2204_v45 = vld [vmem:[#allocation2 + $0xb8] sm:$0xf] }
 0x2a1   :  { %2924 = vmatpush1.bf16.msra.mxu1 %v2923_v2  ;;  %v1577_v54 = vsel %vm432_vm7, %v3142_v7, %v3236_v19  ;;  %v1571_v5 = vsel %vm432_vm7, %v4704_v8, %v3191_v63  ;;  %v1572_v41 = vsel %vm432_vm7, %v3191_v63, %v3192_v0  ;;  %v1578_v43 = vsel %vm432_vm7, %v3236_v19, %v3237_v16  ;;  %v3195_v48 = vpop.permute.xlu1 %3194 }
 0x2a2   :  { %2926 = vmatprep.subr.bf16.mxu1 %v2925_v4  ;;  %v2911_v60 = vpack.c.bf16 %v1577_v54, %v1571_v5  ;;  %v3255_v24 = vpop.permute.xlu0 %3254  ;;  %v2909_v42 = vpack.c.bf16 %v1578_v43, %v1572_v41  ;;  %v3197_v17 = vunpack.i.h.bf16 %v3195_v48  ;;  %v3196_v52 = vunpack.i.l.bf16 %v3195_v48  ;;  %v1988_v41 = vld [vmem:[#allocation2 + $0x80] sm:$0xf] }
 0x2a3   :  { %v3257_v9 = vunpack.i.h.bf16 %v3255_v24  ;;  %v3256_v7 = vunpack.i.l.bf16 %v3255_v24  ;;  %2002 = vrot.lane.b32.xlu0 %v1988_v41, %s3384_s10  ;;  %v2257_v24 = vld [vmem:[#allocation2 + $0xb8] sm:$0xf] }
 0x2a4   :  { %2910 = vmatprep.subr.bf16.mxu0 %v2909_v42  ;;  %v1297_v50 = vsel %vm299_vm4, %v3157_v31, %v3196_v52  ;;  %v1298_v44 = vsel %vm299_vm4, %v3196_v52, %v3197_v17  ;;  %v1945_v42 = vstv %s2803_s6  ;;  %v1964_v17 = vld [vmem:[%s4635_s1 + $0x4] sm:$0xff] }
 0x2a5   :  { %2928 = vmatpush1.bf16.msra.mxu1 %v2927_v47  ;;  %v1303_v53 = vsel %vm299_vm4, %v3202_v61, %v3256_v7  ;;  %2912 = vmatpush1.bf16.msra.mxu0 %v2911_v60  ;;  %v1304_v21 = vsel %vm299_vm4, %v3256_v7, %v3257_v9  ;;  %v3240_v14 = vpop.permute.xlu1 %3239  ;;  %v2218_v60 = vrot.slane %v2204_v45, 4 }
 0x2a6   :  { %2930 = vmatprep.subr.bf16.mxu1 %v4705_v12  ;;  %v2935_v62 = vpack.c.bf16 %v1303_v53, %v1297_v50  ;;  %v3260_v46 = vpop.permute.xlu0 %3259  ;;  %v2933_v28 = vpack.c.bf16 %v1304_v21, %v1298_v44  ;;  %v3242_v2 = vunpack.i.h.bf16 %v3240_v14  ;;  %v3241_v56 = vunpack.i.l.bf16 %v3240_v14 }
 0x2a7   :  { %v3262_v23 = vunpack.i.h.bf16 %v3260_v46  ;;  %v3261_v22 = vunpack.i.l.bf16 %v3260_v46  ;;  %2101 = vrot.lane.b32.xlu0 %v2087_v55, %s3385_s11  ;;  %v1970_v50 = vcombine.high %v1964_v17, %v1964_v17 }
 0x2a8   :  { %1861 = vmatmul.mubr.f32.vlgmr.msra.gmra.mrb[8].mxu0 %v3935_v26  ;;  %v1389_v61 = vsel %vm343_vm5, %v3162_v36, %v3241_v56  ;;  %v1390_v31 = vsel %vm343_vm5, %v3241_v56, %v3242_v2 }
 0x2a9   :  { %2932 = vmatpush1.bf16.msra.mxu1 %v2931_v15  ;;  %v1395_v1 = vsel %vm343_vm5, %v3207_v20, %v3261_v22  ;;  %v1396_v33 = vsel %vm343_vm5, %v3261_v22, %v3262_v23  ;;  %2528 = vmatprep.mubr.f32.mxu0 %v4384_v40  ;;  %v3245_v10 = vpop.permute.xlu1 %3244 }
 0x2aa   :  { %2934 = vmatprep.subr.bf16.mxu1 %v2933_v28  ;;  %v2939_v11 = vpack.c.bf16 %v1395_v1, %v1389_v61  ;;  %v3265_v32 = vpop.permute.xlu0 %3264  ;;  %v2937_v29 = vpack.c.bf16 %v1396_v33, %v1390_v31  ;;  %v3247_v20 = vunpack.i.h.bf16 %v3245_v10  ;;  %v3246_v30 = vunpack.i.l.bf16 %v3245_v10 }
 0x2ab   :  { %v3267_v13 = vunpack.i.h.bf16 %v3265_v32  ;;  %v3266_v25 = vunpack.i.l.bf16 %v3265_v32 }
 0x2ac   :  { %v1481_v36 = vsel %vm388_vm6, %v3167_v59, %v3246_v30  ;;  %v1482_v35 = vsel %vm388_vm6, %v3246_v30, %v3247_v20 }
 0x2ad   :  { %2936 = vmatpush1.bf16.msra.mxu1 %v2935_v62  ;;  %v1487_v18 = vsel %vm388_vm6, %v3212_v57, %v3266_v25  ;;  %v1488_v58 = vsel %vm388_vm6, %v3266_v25, %v3267_v13  ;;  %v3250_v37 = vpop.permute.xlu1 %3249  ;;  %v4706_v13 = vld [vmem:[#allocation19_spill] sm:$0xff] }
 0x2ae   :  { %2938 = vmatprep.subr.bf16.mxu1 %v2937_v29  ;;  %v2943_v27 = vpack.c.bf16 %v1487_v18, %v1481_v36  ;;  %v3270_v51 = vpop.permute.xlu0 %3269  ;;  %v2941_v47 = vpack.c.bf16 %v1488_v58, %v1482_v35  ;;  %v3252_v63 = vunpack.i.h.bf16 %v3250_v37  ;;  %v3251_v54 = vunpack.i.l.bf16 %v3250_v37 }
 0x2af   :  { %v3272_v4 = vunpack.i.h.bf16 %v3270_v51  ;;  %v3271_v19 = vunpack.i.l.bf16 %v3270_v51 }
 0x2b0   :  { %v1573_v38 = vsel %vm432_vm7, %v3192_v0, %v3251_v54  ;;  %v1574_v57 = vsel %vm432_vm7, %v3251_v54, %v3252_v63  ;;  %v2133_v0 = vld [vmem:[#allocation2 + $0x80] sm:$0xf] }
 0x2b1   :  { %2940 = vmatpush1.bf16.msra.mxu1 %v2939_v11  ;;  %v1579_v39 = vsel %vm432_vm7, %v3237_v16, %v3271_v19  ;;  %v1580_v59 = vsel %vm432_vm7, %v3271_v19, %v3272_v4  ;;  %v2048_v16 = vrot.slane %v2034_v49, 4  ;;  %v2147_v43 = vrot.slane %v2133_v0, 4 }
 0x2b2   :  { %2942 = vmatprep.subr.bf16.mxu1 %v2941_v47  ;;  %v2945_v8 = vpack.c.bf16 %v1580_v59, %v1574_v57  ;;  %v2947_v5 = vpack.c.bf16 %v1579_v39, %v1573_v38  ;;  %v4707_v38 = vld [vmem:[#allocation17_spill] sm:$0xff] }
 0x2b3   :  { %2055 = vrot.lane.b32.xlu1 %v2048_v16, %s3383_s3 }
 0x2b5   :  { %2944 = vmatpush1.bf16.msra.mxu1 %v2943_v27 }
 0x2b6   :  { %2946 = vmatprep.subr.bf16.mxu1 %v2945_v8  ;;  %v4708_v8 = vld [vmem:[#allocation18_spill] sm:$0xff] }
 0x2b7   :  { %2154 = vrot.lane.b32.xlu1 %v2147_v43, %s3386_s12 }
 0x2b9   :  { %2948 = vmatpush1.bf16.msra.mxu1 %v2947_v5 }
 0x2bb   :  { %2231 = vrot.lane.b32.xlu1 %v2218_v60, %s3387_s13 }
 0x2bc   :  { %1932 = vmatmul.mubr.f32.vlgmr.msra.gmra.mrb[6].mxu1 %v3935_v26 }
 0x2bd   :  { %v1718_v26 = vpop.permute.xlu1 %1717 }
 0x2bf   :  { %2277 = vrot.lane.b32.xlu1 %v2257_v24, %s3388_s14 }
 0x368   :  { %v1791_v48 = vpop.f32.mrb[4].mxu1 }
 0x369   :  { %v1792_v9 = vadd.f32 %v1791_v48, %v1718_v26  ;;  %v1793_v7 = vpop.f32.mrb[5].mxu1 }
 0x36a   :  { %v1794_v52 = vadd.f32 %v1793_v7, %v1718_v26 }
 0x36b   :  { %vm1938_vm11 = vcmp.gt.f32.partialorder %v1792_v9, 0.0  ;;  %v1946_v12 = vmul.f32 %v1945_v42, %v1792_v9 }
 0x36c   :  { %vm1939_vm12 = vcmp.gt.f32.partialorder %v1794_v52, 0.0  ;;  %v1947_v15 = vmul.f32 %v1945_v42, %v1794_v52 }
 0x36d   :  { %v1952_v53 = vsel %vm1938_vm11, %v1792_v9, %v1946_v12 }
 0x36e   :  { %v1958_v44 = vmul.f32 %v1952_v53, %v3792_v3  ;;  %v1953_v21 = vsel %vm1939_vm12, %v1794_v52, %v1947_v15  ;;  %v1965_v3 = vld [vmem:[%s4635_s1 + $0xc] sm:$0xff] }
 0x36f   :  { %v1959_v62 = vmul.f32 %v1953_v21, %v3797_v6  ;;  %v1971_v32 = vcombine.high %v1965_v3, %v1965_v3 }
 0x370   :  { %v1976_v46 = vsub.f32 %v1958_v44, %v1964_v17 }
 0x371   :  { %v1977_v14 = vsub.f32 %v1959_v62, %v1970_v50 }
 0x372   :  { %1982 = vst [vmem:[#allocation2 + $0x88] sm:$0xf] %v1976_v46 }
 0x373   :  { %1983 = vst [vmem:[#allocation2 + $0x90] sm:$0xf] %v1977_v14 }
 0x379   :  { %v2186_v28 = vld [vmem:[#allocation2 + $0x88] sm:$0xf] }
 0x37a   :  { %v1989_v23 = vld [vmem:[#allocation2 + $0x88] sm:$0xf]  ;;  %2192 = vst [vmem:[#allocation3 + $0x60] sm:$0xf] %v2186_v28  ;;  %v2187_v33 = vld [vmem:[#allocation2 + $0x90] sm:$0xf] }
 0x37b   :  { %2004 = vrot.lane.b32.xlu0 %v1989_v23, %s3384_s10  ;;  %v1862_v22 = vpop.f32.mrb[8].mxu0  ;;  %v2088_v1 = vld [vmem:[#allocation2 + $0x88] sm:$0xf]  ;;  %2193 = vst [vmem:[#allocation3 + $0x68] sm:$0xf] %v2187_v33 }
 0x37c   :  { %v1863_v2 = vadd.f32 %v1862_v22, %v1718_v26  ;;  %v1864_v56 = vpop.f32.mrb[9].mxu0  ;;  %v2251_v4 = vld [vmem:[#allocation2 + $0x88] sm:$0xf]  ;;  %v2252_v19 = vld [vmem:[#allocation2 + $0x90] sm:$0xf] }
 0x37d   :  { %v1865_v61 = vadd.f32 %v1864_v56, %v1718_v26  ;;  %v2350_v60 = vld [vmem:[#allocation2 + $0x88] sm:$0xf]  ;;  %v1990_v48 = vld [vmem:[#allocation2 + $0x90] sm:$0xf] }
 0x37e   :  { %vm1940_vm13 = vcmp.gt.f32.partialorder %v1863_v2, 0.0  ;;  %v1948_v6 = vmul.f32 %v1945_v42, %v1863_v2  ;;  %v2035_v9 = vld [vmem:[#allocation2 + $0x88] sm:$0xf]  ;;  %v2089_v17 = vld [vmem:[#allocation2 + $0x90] sm:$0xf] }
 0x37f   :  { %2103 = vrot.lane.b32.xlu0 %v2088_v1, %s3385_s11  ;;  %vm1941_vm14 = vcmp.gt.f32.partialorder %v1865_v61, 0.0  ;;  %v1949_v31 = vmul.f32 %v1945_v42, %v1865_v61  ;;  %v2049_v7 = vrot.slane %v2035_v9, 4  ;;  %v2134_v52 = vld [vmem:[#allocation2 + $0x88] sm:$0xf]  ;;  %v2351_v53 = vld [vmem:[#allocation2 + $0x90] sm:$0xf]  ;;  %v2056_v9 = vpop.permute.xlu1 %2055 }
 0x380   :  { %v1954_v11 = vsel %vm1940_vm13, %v1863_v2, %v1948_v6  ;;  %v2148_v15 = vrot.slane %v2134_v52, 4  ;;  %v2198_v44 = vld [vmem:[#allocation2 + $0x88] sm:$0xf]  ;;  %v2199_v2 = vld [vmem:[#allocation2 + $0x90] sm:$0xf]  ;;  %v2428_v52 = vld [vmem:[%s4641_s7] sm:$0xff] }
 0x381   :  { %v1960_v10 = vmul.f32 %v1954_v11, %v3837_v34  ;;  %v1955_v29 = vsel %vm1941_vm14, %v1865_v61, %v1949_v31  ;;  %v1966_v34 = vld [vmem:[%s4635_s1 + $0x14] sm:$0xff]  ;;  %v2212_v62 = vrot.slane %v2198_v44, 4  ;;  %v2297_v14 = vld [vmem:[#allocation2 + $0x88] sm:$0xf]  ;;  %v2213_v1 = vrot.slane %v2199_v2, 4 }
 0x382   :  { %v1961_v25 = vmul.f32 %v1955_v29, %v4706_v13  ;;  %v1972_v39 = vcombine.high %v1966_v34, %v1966_v34  ;;  %v2311_v23 = vrot.slane %v2297_v14, 4  ;;  %v2298_v61 = vld [vmem:[#allocation2 + $0x90] sm:$0xf] }
 0x383   :  { %v1978_v20 = vsub.f32 %v1960_v10, %v1965_v3  ;;  %v2312_v31 = vrot.slane %v2298_v61, 4  ;;  %v2036_v33 = vld [vmem:[#allocation2 + $0x90] sm:$0xf] }
 0x384   :  { %v1979_v30 = vsub.f32 %v1961_v25, %v1971_v32  ;;  %v2050_v32 = vrot.slane %v2036_v33, 4  ;;  %v2135_v29 = vld [vmem:[#allocation2 + $0x90] sm:$0xf] }
 0x385   :  { %1984 = vst [vmem:[#allocation2 + $0x98] sm:$0xf] %v1978_v20  ;;  %v2149_v25 = vrot.slane %v2135_v29, 4 }
 0x386   :  { %1985 = vst [vmem:[#allocation2 + $0xa0] sm:$0xf] %v1979_v30 }
 0x38c   :  { %v2188_v18 = vld [vmem:[#allocation2 + $0x98] sm:$0xf] }
 0x38d   :  { %v2253_v36 = vld [vmem:[#allocation2 + $0x98] sm:$0xf]  ;;  %2194 = vst [vmem:[#allocation3 + $0x70] sm:$0xf] %v2188_v18  ;;  %v1992_v55 = vld [vmem:[#allocation2 + $0xa0] sm:$0xf] }
 0x38e   :  { %v2352_v35 = vld [vmem:[#allocation2 + $0x98] sm:$0xf]  ;;  %2269 = vrot.lane.b32.xlu1 %v2253_v36, %s3388_s14  ;;  %v2189_v49 = vld [vmem:[#allocation2 + $0xa0] sm:$0xf] }
 0x38f   :  { %v1933_v58 = vpop.f32.mrb[6].mxu1  ;;  %2368 = vrot.lane.b32.xlu0 %v2352_v35, %s3390_s16  ;;  %v1991_v41 = vld [vmem:[#allocation2 + $0x98] sm:$0xf]  ;;  %2195 = vst [vmem:[#allocation3 + $0x78] sm:$0xf] %v2189_v49 }
 0x390   :  { %v1934_v27 = vadd.f32 %v1933_v58, %v1718_v26  ;;  %v1935_v51 = vpop.f32.mrb[7].mxu1  ;;  %v2090_v43 = vld [vmem:[#allocation2 + $0x98] sm:$0xf]  ;;  %v2091_v45 = vld [vmem:[#allocation2 + $0xa0] sm:$0xf] }
 0x391   :  { %v1936_v37 = vadd.f32 %v1935_v51, %v1718_v26  ;;  %v2254_v24 = vld [vmem:[#allocation2 + $0xa0] sm:$0xf]  ;;  %v2200_v50 = vld [vmem:[#allocation2 + $0x98] sm:$0xf] }
 0x392   :  { %vm1942_vm15 = vcmp.gt.f32.partialorder %v1934_v27, 0.0  ;;  %v1950_v47 = vmul.f32 %v1945_v42, %v1934_v27  ;;  %2265 = vrot.lane.b32.xlu1 %v2251_v4, %s3388_s14  ;;  %v2214_v21 = vrot.slane %v2200_v50, 4  ;;  %v2299_v46 = vld [vmem:[#allocation2 + $0x98] sm:$0xf]  ;;  %v2038_v11 = vld [vmem:[#allocation2 + $0xa0] sm:$0xf] }
 0x393   :  { %vm1943_vm10 = vcmp.gt.f32.partialorder %v1936_v37, 0.0  ;;  %v1951_v63 = vmul.f32 %v1945_v42, %v1936_v37  ;;  %2267 = vrot.lane.b32.xlu0 %v2252_v19, %s3388_s14  ;;  %v2353_v42 = vld [vmem:[#allocation2 + $0xa0] sm:$0xf]  ;;  %v2313_v28 = vrot.slane %v2299_v46, 4  ;;  %v2037_v22 = vld [vmem:[#allocation2 + $0x98] sm:$0xf] }
 0x394   :  { %v1956_v54 = vsel %vm1942_vm15, %v1934_v27, %v1950_v47  ;;  %v2051_v56 = vrot.slane %v2037_v22, 4  ;;  %v2136_v3 = vld [vmem:[#allocation2 + $0x98] sm:$0xf]  ;;  %v2052_v10 = vrot.slane %v2038_v11, 4  ;;  %v2137_v13 = vld [vmem:[#allocation2 + $0xa0] sm:$0xf] }
 0x395   :  { %v1962_v57 = vmul.f32 %v1956_v54, %v4707_v38  ;;  %v1957_v59 = vsel %vm1943_vm10, %v1936_v37, %v1951_v63  ;;  %v2150_v6 = vrot.slane %v2136_v3, 4  ;;  %v2151_v20 = vrot.slane %v2137_v13, 4  ;;  %v2201_v30 = vld [vmem:[#allocation2 + $0xa0] sm:$0xf] }
 0x396   :  { %v1963_v5 = vmul.f32 %v1957_v59, %v4708_v8  ;;  %2008 = vrot.lane.b32.xlu1 %v1991_v41, %s3384_s10  ;;  %v2215_v18 = vrot.slane %v2201_v30, 4  ;;  %v2300_v35 = vld [vmem:[#allocation2 + $0xa0] sm:$0xf] }
 0x397   :  { %v1980_v16 = vsub.f32 %v1962_v57, %v1966_v34  ;;  %2010 = vrot.lane.b32.xlu0 %v1992_v55, %s3384_s10  ;;  %v2314_v58 = vrot.slane %v2300_v35, 4 }
 0x398   :  { %v1981_v0 = vsub.f32 %v1963_v5, %v1972_v39 }
 0x399   :  { %1986 = vst [vmem:[#allocation2 + $0xa8] sm:$0xf] %v1980_v16  ;;  %v2303_v16 = vld [vmem:[#allocation2 + $0xb8] sm:$0xf] }
 0x39a   :  { %1987 = vst [vmem:[#allocation2 + $0xb0] sm:$0xf] %v1981_v0  ;;  %2107 = vrot.lane.b32.xlu1 %v2090_v43, %s3385_s11 }
 0x39b   :  { %2109 = vrot.lane.b32.xlu0 %v2091_v45, %s3385_s11  ;;  %v2003_v45 = vpop.permute.xlu0 %2002 }
 0x39e   :  { %2364 = vrot.lane.b32.xlu1 %v2350_v60, %s3390_s16 }
 0x39f   :  { %2271 = vrot.lane.b32.xlu0 %v2254_v24, %s3388_s14  ;;  %v2317_v24 = vrot.slane %v2303_v16, 4 }
 0x3a0   :  { %v2190_v26 = vld [vmem:[#allocation2 + $0xa8] sm:$0xf] }
 0x3a1   :  { %2196 = vst [vmem:[#allocation3 + $0x80] sm:$0xf] %v2190_v26  ;;  %v2191_v12 = vld [vmem:[#allocation2 + $0xb0] sm:$0xf]  ;;  %v2255_v36 = vld [vmem:[#allocation2 + $0xa8] sm:$0xf] }
 0x3a2   :  { %2006 = vrot.lane.b32.xlu1 %v1990_v48, %s3384_s10  ;;  %2197 = vst [vmem:[#allocation3 + $0x88] sm:$0xf] %v2191_v12  ;;  %v2354_v27 = vld [vmem:[#allocation2 + $0xa8] sm:$0xf]  ;;  %v1994_v51 = vld [vmem:[#allocation2 + $0xb0] sm:$0xf]  ;;  %v2102_v48 = vpop.permute.xlu0 %2101 }
 0x3a3   :  { %2370 = vrot.lane.b32.xlu0 %v2353_v42, %s3390_s16  ;;  %v1993_v34 = vld [vmem:[#allocation2 + $0xa8] sm:$0xf]  ;;  %v2093_v37 = vld [vmem:[#allocation2 + $0xb0] sm:$0xf]  ;;  %v2356_v42 = vld [vmem:[#allocation2 + $0xb8] sm:$0xf] }
 0x3a4   :  { %v2092_v47 = vld [vmem:[#allocation2 + $0xa8] sm:$0xf]  ;;  %v2256_v63 = vld [vmem:[#allocation2 + $0xb0] sm:$0xf] }
 0x3a5   :  { %v2202_v4 = vld [vmem:[#allocation2 + $0xa8] sm:$0xf]  ;;  %v2040_v59 = vld [vmem:[#allocation2 + $0xb0] sm:$0xf] }
 0x3a6   :  { %2105 = vrot.lane.b32.xlu1 %v2089_v17, %s3385_s11  ;;  %v2216_v19 = vrot.slane %v2202_v4, 4  ;;  %v2301_v54 = vld [vmem:[#allocation2 + $0xa8] sm:$0xf]  ;;  %v2054_v5 = vrot.slane %v2040_v59, 4  ;;  %v2139_v55 = vld [vmem:[#allocation2 + $0xb0] sm:$0xf] }
 0x3a7   :  { %2057 = vrot.lane.b32.xlu0 %v2049_v7, %s3383_s3  ;;  %v2039_v39 = vld [vmem:[#allocation2 + $0xa8] sm:$0xf]  ;;  %v2315_v38 = vrot.slane %v2301_v54, 4  ;;  %v2203_v49 = vld [vmem:[#allocation2 + $0xb0] sm:$0xf]  ;;  %v2153_v0 = vrot.slane %v2139_v55, 4 }
 0x3a8   :  { %v2053_v57 = vrot.slane %v2039_v39, 4  ;;  %v2138_v8 = vld [vmem:[#allocation2 + $0xa8] sm:$0xf]  ;;  %v2217_v43 = vrot.slane %v2203_v49, 4  ;;  %v2302_v60 = vld [vmem:[#allocation2 + $0xb0] sm:$0xf] }
 0x3a9   :  { %v2152_v41 = vrot.slane %v2138_v8, 4  ;;  %v2316_v26 = vrot.slane %v2302_v60, 4  ;;  %v2355_v7 = vld [vmem:[#allocation2 + $0xb0] sm:$0xf]  ;;  %v2429_v17 = vld [vmem:[%s4641_s7 + $0x8] sm:$0xff] }
 0x3aa   :  { %2366 = vrot.lane.b32.xlu1 %v2351_v53, %s3390_s16  ;;  %v2155_v53 = vpop.permute.xlu1 %2154 }
 0x3ab   :  { %2156 = vrot.lane.b32.xlu0 %v2148_v15, %s3386_s12 }
 0x3ae   :  { %2223 = vrot.lane.b32.xlu1 %v2214_v21, %s3387_s13  ;;  %v4483_v21 = vpop.permute.xlu1 %2231 }
 0x3af   :  { %2219 = vrot.lane.b32.xlu0 %v2212_v62, %s3387_s13 }
 0x3b2   :  { %2322 = vrot.lane.b32.xlu1 %v2313_v28, %s3389_s15  ;;  %v4485_v62 = vpop.permute.xlu1 %2277 }
 0x3b3   :  { %2318 = vrot.lane.b32.xlu0 %v2311_v23, %s3389_s15 }
 0x3b6   :  { %2061 = vrot.lane.b32.xlu1 %v2051_v56, %s3383_s3 }
 0x3b7   :  { %2221 = vrot.lane.b32.xlu0 %v2213_v1, %s3387_s13 }
 0x3ba   :  { %2160 = vrot.lane.b32.xlu1 %v2150_v6, %s3386_s12 }
 0x3bb   :  { %2320 = vrot.lane.b32.xlu0 %v2312_v31, %s3389_s15 }
 0x3be   :  { %2059 = vrot.lane.b32.xlu1 %v2050_v32, %s3383_s3 }
 0x3bf   :  { %2063 = vrot.lane.b32.xlu0 %v2052_v10, %s3383_s3 }
 0x3c2   :  { %2158 = vrot.lane.b32.xlu1 %v2149_v25, %s3386_s12 }
 0x3c3   :  { %2162 = vrot.lane.b32.xlu0 %v2151_v20, %s3386_s12 }
 0x3c6   :  { %2273 = vrot.lane.b32.xlu1 %v2255_v36, %s3388_s14 }
 0x3c7   :  { %2225 = vrot.lane.b32.xlu0 %v2215_v18, %s3387_s13 }
 0x3ca   :  { %2372 = vrot.lane.b32.xlu1 %v2354_v27, %s3390_s16 }
 0x3cb   :  { %2324 = vrot.lane.b32.xlu0 %v2314_v58, %s3389_s15 }
 0x3ce   :  { %2014 = vrot.lane.b32.xlu1 %v1994_v51, %s3384_s10 }
 0x3cf   :  { %2012 = vrot.lane.b32.xlu0 %v1993_v34, %s3384_s10 }
 0x3d2   :  { %2113 = vrot.lane.b32.xlu1 %v2093_v37, %s3385_s11 }
 0x3d3   :  { %2111 = vrot.lane.b32.xlu0 %v2092_v47, %s3385_s11 }
 0x3d6   :  { %2227 = vrot.lane.b32.xlu1 %v2216_v19, %s3387_s13 }
 0x3d7   :  { %2275 = vrot.lane.b32.xlu0 %v2256_v63, %s3388_s14 }
 0x3da   :  { %2326 = vrot.lane.b32.xlu1 %v2315_v38, %s3389_s15 }
 0x3db   :  { %2065 = vrot.lane.b32.xlu0 %v2053_v57, %s3383_s3 }
 0x3de   :  { %2067 = vrot.lane.b32.xlu1 %v2054_v5, %s3383_s3 }
 0x3df   :  { %2164 = vrot.lane.b32.xlu0 %v2152_v41, %s3386_s12 }
 0x3e2   :  { %2166 = vrot.lane.b32.xlu1 %v2153_v0, %s3386_s12 }
 0x3e3   :  { %2229 = vrot.lane.b32.xlu0 %v2217_v43, %s3387_s13 }
 0x3e6   :  { %2330 = vrot.lane.b32.xlu1 %v2317_v24, %s3389_s15 }
 0x3e7   :  { %2328 = vrot.lane.b32.xlu0 %v2316_v26, %s3389_s15  ;;  %s3393_s15 = smov [#allocation12]  }
 0x3ea   :  { %2376 = vrot.lane.b32.xlu1 %v2356_v42, %s3390_s16 }
 0x3eb   :  { %2374 = vrot.lane.b32.xlu0 %v2355_v7, %s3390_s16  ;;  %s2774_s16 = sshll.u32 %s3393_s15, 4  ;;  %s2775_s16 = int_to_ptr.vmem [resolvable:$true] %s2774_s16 }
 0x3ec   :  { %s3348_s30 = scalar_lea.vmem %s2775_s16, 1536  ;;  %p3353_p6 = scmp.lt.s32.totalorder %s2775_s16, %s2775_s16 }
 0x3ed   :  { %v2005_v12 = vpop.permute.xlu0 %2004  ;;  %p3349_p5 = scmp.ne.s32.totalorder %s2775_s16, %s3348_s30  ;;  %p3354_p7 = scmp.lt.s32.totalorder %s3348_s30, %s3348_s30 }
 0x3ee   :  { %v2016_v15 = vsel %vm102_vm1, %v2003_v45, %v2005_v12  ;;  %2437 = vperm.xlu1 %2992, %v2429_v17  }
 0x3ef   :  { %2028 = vst [vmem:[#allocation3] sm:$0xf] %v2016_v15  ;;  %2432 = vperm.xlu0 %2991, %v2428_v52   ;;  %p3355_p8 = por %p3354_p7, %p3353_p6 }
 0x3f1   :  { %v2104_v50 = vpop.permute.xlu0 %2103  ;;  %p3356_p9 = pnand %p3355_p8, %p3349_p5 }
 0x3f2   :  { %v2115_v44 = vsel %vm191_vm2, %v2102_v48, %v2104_v50 }
 0x3f3   :  { %2127 = vst [vmem:[#allocation3 + $0x30] sm:$0xf] %v2115_v44 }
 0x400   :  { %v2270_v46 = vpop.permute.xlu1 %2269 }
 0x401   :  { %v2369_v14 = vpop.permute.xlu0 %2368 }
 0x404   :  { %v2266_v28 = vpop.permute.xlu1 %2265 }
 0x405   :  { %v2268_v23 = vpop.permute.xlu0 %2267 }
 0x406   :  { %v2279_v22 = vsel %vm343_vm5, %v2266_v28, %v2268_v23  ;;  %v2280_v2 = vsel %vm343_vm5, %v2268_v23, %v2270_v46 }
 0x407   :  { %2291 = vst [vmem:[#allocation3 + $0x90] sm:$0xf] %v2279_v22  ;;  %2292 = vst [vmem:[#allocation3 + $0x98] sm:$0xf] %v2280_v2 }
 0x408   :  { %v2009_v56 = vpop.permute.xlu1 %2008 }
 0x409   :  { %v4489_v1 = vpop.permute.xlu0 %2010 }
 0x40a   :  { %v2019_v3 = vsel %vm102_vm1, %v2009_v56, %v4489_v1 }
 0x40b   :  { %2031 = vst [vmem:[#allocation3 + $0x18] sm:$0xf] %v2019_v3 }
 0x40c   :  { %v2108_v61 = vpop.permute.xlu1 %2107 }
 0x40d   :  { %v4493_v6 = vpop.permute.xlu0 %2109 }
 0x40e   :  { %v2118_v31 = vsel %vm191_vm2, %v2108_v61, %v4493_v6 }
 0x40f   :  { %2130 = vst [vmem:[#allocation3 + $0x48] sm:$0xf] %v2118_v31 }
 0x410   :  { %v2365_v33 = vpop.permute.xlu1 %2364 }
 0x411   :  { %v2272_v11 = vpop.permute.xlu0 %2271 }
 0x412   :  { %v2281_v32 = vsel %vm343_vm5, %v2270_v46, %v2272_v11 }
 0x413   :  { %2293 = vst [vmem:[#allocation3 + $0xa0] sm:$0xf] %v2281_v32 }
 0x414   :  { %v2007_v10 = vpop.permute.xlu1 %2006 }
 0x415   :  { %v4498_v29 = vpop.permute.xlu0 %2370  ;;  %v2017_v13 = vsel %vm102_vm1, %v2005_v12, %v2007_v10  ;;  %v2018_v25 = vsel %vm102_vm1, %v2007_v10, %v2009_v56 }
 0x416   :  { %v2380_v20 = vsel %vm432_vm7, %v2369_v14, %v4498_v29  ;;  %2029 = vst [vmem:[#allocation3 + $0x8] sm:$0xf] %v2017_v13  ;;  %2030 = vst [vmem:[#allocation3 + $0x10] sm:$0xf] %v2018_v25 }
 0x417   :  { %2392 = vst [vmem:[#allocation3 + $0xd0] sm:$0xf] %v2380_v20 }
 0x418   :  { %v2106_v30 = vpop.permute.xlu1 %2105 }
 0x419   :  { %v2058_v18 = vpop.permute.xlu0 %2057  ;;  %v2116_v36 = vsel %vm191_vm2, %v2104_v50, %v2106_v30  ;;  %v2117_v35 = vsel %vm191_vm2, %v2106_v30, %v2108_v61 }
 0x41a   :  { %v2069_v58 = vsel %vm147_vm0, %v2056_v9, %v2058_v18  ;;  %2128 = vst [vmem:[#allocation3 + $0x38] sm:$0xf] %v2116_v36  ;;  %2129 = vst [vmem:[#allocation3 + $0x40] sm:$0xf] %v2117_v35  ;;  %v4544_v35 = vld [vmem:[%s4638_s4] sm:$0xff] }
 0x41b   :  { %2081 = vst [vmem:[#allocation3] sm:$0xf0] %v2069_v58 }
 0x41c   :  { %v2367_v27 = vpop.permute.xlu1 %2366 }
 0x41d   :  { %v2157_v51 = vpop.permute.xlu0 %2156  ;;  %v2378_v34 = vsel %vm432_vm7, %v2365_v33, %v2367_v27  ;;  %v2379_v37 = vsel %vm432_vm7, %v2367_v27, %v2369_v14 }
 0x41e   :  { %v2168_v47 = vsel %vm236_vm3, %v2155_v53, %v2157_v51  ;;  %2390 = vst [vmem:[#allocation3 + $0xc0] sm:$0xf] %v2378_v34  ;;  %2391 = vst [vmem:[#allocation3 + $0xc8] sm:$0xf] %v2379_v37 }
 0x41f   :  { %2180 = vst [vmem:[#allocation3 + $0x30] sm:$0xf0] %v2168_v47 }
 0x420   :  { %v2224_v4 = vpop.permute.xlu1 %2223 }
 0x421   :  { %v2220_v19 = vpop.permute.xlu0 %2219 }
 0x422   :  { %v2398_v22 = vld [vmem:[#allocation3] sm:$0xff] }
 0x424   :  { %v2323_v63 = vpop.permute.xlu1 %2322 }
 0x425   :  { %v2319_v54 = vpop.permute.xlu0 %2318  ;;  %v2422_v34 = vld [vmem:[#allocation3 + $0xc0] sm:$0xf] }
 0x426   :  { %v2404_v53 = vld [vmem:[#allocation3 + $0x30] sm:$0xff] }
 0x427   :  { %v2951_v2 = vpack.c.bf16 %v2404_v53, %v2398_v22 }
 0x428   :  { %v2062_v39 = vpop.permute.xlu1 %2061 }
 0x429   :  { %v2222_v38 = vpop.permute.xlu0 %2221 }
 0x42a   :  { %v2233_v57 = vsel %vm299_vm4, %v2220_v19, %v2222_v38  ;;  %v2234_v59 = vsel %vm299_vm4, %v2222_v38, %v2224_v4 }
 0x42b   :  { %2245 = vst [vmem:[#allocation3 + $0x60] sm:$0xf0] %v2233_v57  ;;  %2246 = vst [vmem:[#allocation3 + $0x68] sm:$0xf0] %v2234_v59 }
 0x42c   :  { %v2161_v8 = vpop.permute.xlu1 %2160 }
 0x42d   :  { %v2321_v5 = vpop.permute.xlu0 %2320 }
 0x42e   :  { %v2332_v41 = vsel %vm388_vm6, %v2319_v54, %v2321_v5  ;;  %v2333_v55 = vsel %vm388_vm6, %v2321_v5, %v2323_v63  ;;  %v4557_v54 = vld [vmem:[%s4638_s4 + $0x8] sm:$0xff]  ;;  %s2816_s4 = sld [smem:[#allocation5 + $0x2]] }
 0x42f   :  { %2344 = vst [vmem:[#allocation3 + $0x90] sm:$0xf0] %v2332_v41  ;;  %2345 = vst [vmem:[#allocation3 + $0x98] sm:$0xf0] %v2333_v55 }
 0x430   :  { %v2060_v49 = vpop.permute.xlu1 %2059 }
 0x431   :  { %v4514_v16 = vpop.permute.xlu0 %2063  ;;  %v2070_v0 = vsel %vm147_vm0, %v2058_v18, %v2060_v49  ;;  %v2071_v43 = vsel %vm147_vm0, %v2060_v49, %v2062_v39  ;;  %v2423_v18 = vld [vmem:[#allocation3 + $0xc8] sm:$0xf] }
 0x432   :  { %v2072_v45 = vsel %vm147_vm0, %v2062_v39, %v4514_v16  ;;  %2082 = vst [vmem:[#allocation3 + $0x8] sm:$0xf0] %v2070_v0  ;;  %2083 = vst [vmem:[#allocation3 + $0x10] sm:$0xf0] %v2071_v43  ;;  %v2411_v56 = vld [vmem:[#allocation3 + $0x68] sm:$0xff]  ;;  %v2410_v10 = vld [vmem:[#allocation3 + $0x60] sm:$0xff] }
 0x433   :  { %2084 = vst [vmem:[#allocation3 + $0x18] sm:$0xf0] %v2072_v45 }
 0x434   :  { %v2159_v60 = vpop.permute.xlu1 %2158 }
 0x435   :  { %v4520_v24 = vpop.permute.xlu0 %2162  ;;  %v2169_v26 = vsel %vm236_vm3, %v2157_v51, %v2159_v60  ;;  %v2170_v48 = vsel %vm236_vm3, %v2159_v60, %v2161_v8 }
 0x436   :  { %v2171_v42 = vsel %vm236_vm3, %v2161_v8, %v4520_v24  ;;  %2181 = vst [vmem:[#allocation3 + $0x38] sm:$0xf0] %v2169_v26  ;;  %2182 = vst [vmem:[#allocation3 + $0x40] sm:$0xf0] %v2170_v48  ;;  %v2417_v28 = vld [vmem:[#allocation3 + $0x98] sm:$0xff]  ;;  %v2416_v33 = vld [vmem:[#allocation3 + $0x90] sm:$0xff] }
 0x437   :  { %2183 = vst [vmem:[#allocation3 + $0x48] sm:$0xf0] %v2171_v42  ;;  %v2953_v31 = vpack.c.bf16 %v2417_v28, %v2411_v56 }
 0x438   :  { %v2274_v9 = vpop.permute.xlu1 %2273 }
 0x439   :  { %v2226_v7 = vpop.permute.xlu0 %2225  ;;  %v2282_v17 = vsel %vm343_vm5, %v2272_v11, %v2274_v9  ;;  %v2399_v46 = vld [vmem:[#allocation3 + $0x8] sm:$0xff]  ;;  %v2400_v37 = vld [vmem:[#allocation3 + $0x10] sm:$0xff] }
 0x43a   :  { %v2235_v52 = vsel %vm299_vm4, %v2224_v4, %v2226_v7  ;;  %2294 = vst [vmem:[#allocation3 + $0xa8] sm:$0xf] %v2282_v17  ;;  %v2401_v58 = vld [vmem:[#allocation3 + $0x18] sm:$0xff] }
 0x43b   :  { %2247 = vst [vmem:[#allocation3 + $0x70] sm:$0xf0] %v2235_v52 }
 0x43c   :  { %v4528_v12 = vpop.permute.xlu1 %2372 }
 0x43d   :  { %v2325_v15 = vpop.permute.xlu0 %2324  ;;  %v2381_v50 = vsel %vm432_vm7, %v4498_v29, %v4528_v12  ;;  %v2405_v14 = vld [vmem:[#allocation3 + $0x38] sm:$0xff]  ;;  %v2955_v29 = vpack.c.bf16 %v2416_v33, %v2410_v10 }
 0x43e   :  { %v2334_v44 = vsel %vm388_vm6, %v2323_v63, %v2325_v15  ;;  %2393 = vst [vmem:[#allocation3 + $0xd8] sm:$0xf] %v2381_v50  ;;  %v2949_v23 = vpack.c.bf16 %v2405_v14, %v2399_v46  ;;  %v2407_v36 = vld [vmem:[#allocation3 + $0x48] sm:$0xff]  ;;  %v2424_v50 = vld [vmem:[#allocation3 + $0xd0] sm:$0xf] }
 0x43f   :  { %2346 = vst [vmem:[#allocation3 + $0xa0] sm:$0xf0] %v2334_v44 }
 0x440   :  { %v2015_v3 = vpop.permute.xlu1 %2014  ;;  %2950 = vmatprep.subr.bf16.mxu0 %v2949_v23 }
 0x441   :  { %v2013_v61 = vpop.permute.xlu0 %2012  ;;  %2952 = vmatpush1.bf16.msra.mxu0 %v2951_v2 }
 0x442   :  { %v2020_v11 = vsel %vm102_vm1, %v4489_v1, %v2013_v61  ;;  %v2021_v32 = vsel %vm102_vm1, %v2013_v61, %v2015_v3  ;;  %2954 = vmatprep.subr.bf16.mxu0 %v2953_v31  ;;  %v2406_v1 = vld [vmem:[#allocation3 + $0x40] sm:$0xff]  ;;  %v2412_v42 = vld [vmem:[#allocation3 + $0x70] sm:$0xff] }
 0x443   :  { %2032 = vst [vmem:[#allocation3 + $0x20] sm:$0xf] %v2020_v11  ;;  %2033 = vst [vmem:[#allocation3 + $0x28] sm:$0xf] %v2021_v32  ;;  %v2959_v63 = vpack.c.bf16 %v2406_v1, %v2400_v37 }
 0x444   :  { %v2114_v13 = vpop.permute.xlu1 %2113 }
 0x445   :  { %v2112_v25 = vpop.permute.xlu0 %2111  ;;  %2956 = vmatpush1.bf16.msra.mxu0 %v2955_v29 }
 0x446   :  { %v2119_v20 = vsel %vm191_vm2, %v4493_v6, %v2112_v25  ;;  %v2120_v30 = vsel %vm191_vm2, %v2112_v25, %v2114_v13  ;;  %2804 = vmatprep.subr.msk.mxu0 %vm502_vm8, %v2423_v18  ;;  %v2957_v6 = vpack.c.bf16 %v2407_v36, %v2401_v58  ;;  %v2418_v0 = vld [vmem:[#allocation3 + $0xa0] sm:$0xff]  ;;  %v4594_v25 = vstv %s2816_s4 }
 0x447   :  { %2131 = vst [vmem:[#allocation3 + $0x50] sm:$0xf] %v2119_v20  ;;  %2132 = vst [vmem:[#allocation3 + $0x58] sm:$0xf] %v2120_v30 }
 0x448   :  { %v2228_v27 = vpop.permute.xlu1 %2227 }
 0x449   :  { %v2276_v51 = vpop.permute.xlu0 %2275  ;;  %v2236_v47 = vsel %vm299_vm4, %v2226_v7, %v2228_v27  ;;  %2805 = vmatpush1.msk.msra.mxu0 %vm502_vm8, %v2422_v34 }
 0x44a   :  { %v2283_v4 = vsel %vm343_vm5, %v2274_v9, %v2276_v51  ;;  %v2284_v19 = vsel %vm343_vm5, %v2276_v51, %v4485_v62  ;;  %2248 = vst [vmem:[#allocation3 + $0x78] sm:$0xf0] %v2236_v47  ;;  %2806 = vmatmul.mubr.msk.f32.vlgmr.msra.gmra.mrb[10].mxu0 %vm495_vm9, %v4544_v35  ;;  %2958 = vmatprep.subr.bf16.mxu0 %v2957_v6  ;;  %v2734_v47 = vld [vmem:[#allocation2 + $0x10] sm:$0xff] }
 0x44b   :  { %2295 = vst [vmem:[#allocation3 + $0xb0] sm:$0xf] %v2283_v4  ;;  %2296 = vst [vmem:[#allocation3 + $0xb8] sm:$0xf] %v2284_v19  ;;  %2960 = vmatpush1.bf16.msra.mxu0 %v2959_v63  ;;  %2534 = vmatprep.mubr.f32.mxu0 %v4384_v40 }
 0x44c   :  { %v2327_v39 = vpop.permute.xlu1 %2326 }
 0x44d   :  { %v2066_v62 = vpop.permute.xlu0 %2065  ;;  %v2335_v38 = vsel %vm388_vm6, %v2325_v15, %v2327_v39  ;;  %v2425_v15 = vld [vmem:[#allocation3 + $0xd8] sm:$0xf] }
 0x44e   :  { %v2073_v57 = vsel %vm147_vm0, %v4514_v16, %v2066_v62  ;;  %2347 = vst [vmem:[#allocation3 + $0xa8] sm:$0xf0] %v2335_v38  ;;  %2807 = vmatmul.mubr.msk.f32.gmra.mrb[12].mxu0 %vm495_vm9, %v4557_v54 }
 0x44f   :  { %2085 = vst [vmem:[#allocation3 + $0x20] sm:$0xf0] %v2073_v57  ;;  %2605 = vmatprep.mubr.f32.mxu0 %v4384_v40 }
 0x450   :  { %v2068_v59 = vpop.permute.xlu1 %2067 }
 0x451   :  { %v2165_v8 = vpop.permute.xlu0 %2164  ;;  %v2074_v5 = vsel %vm147_vm0, %v2066_v62, %v2068_v59  ;;  %v2413_v60 = vld [vmem:[#allocation3 + $0x78] sm:$0xff]  ;;  %v2739_v62 = vld [vmem:[#allocation2 + $0x48] sm:$0xff]  ;;  %v2740_v59 = vld [vmem:[#allocation2 + $0x50] sm:$0xff] }
 0x452   :  { %v2172_v41 = vsel %vm236_vm3, %v4520_v24, %v2165_v8  ;;  %2086 = vst [vmem:[#allocation3 + $0x28] sm:$0xf0] %v2074_v5  ;;  %v2963_v24 = vpack.c.bf16 %v2418_v0, %v2412_v42 }
 0x453   :  { %2184 = vst [vmem:[#allocation3 + $0x50] sm:$0xf0] %v2172_v41 }
 0x454   :  { %v2167_v55 = vpop.permute.xlu1 %2166 }
 0x455   :  { %v2230_v49 = vpop.permute.xlu0 %2229  ;;  %v2173_v16 = vsel %vm236_vm3, %v2165_v8, %v2167_v55  ;;  %v2419_v26 = vld [vmem:[#allocation3 + $0xa8] sm:$0xff] }
 0x456   :  { %v2237_v43 = vsel %vm299_vm4, %v2228_v27, %v2230_v49  ;;  %v2238_v45 = vsel %vm299_vm4, %v2230_v49, %v4483_v21  ;;  %2185 = vst [vmem:[#allocation3 + $0x58] sm:$0xf0] %v2173_v16  ;;  %v2961_v48 = vpack.c.bf16 %v2419_v26, %v2413_v60  ;;  %v2402_v2 = vld [vmem:[#allocation3 + $0x20] sm:$0xff]  ;;  %v2733_v27 = vld [vmem:[#allocation2 + $0x8] sm:$0xff]  ;;  %v2735_v60 = vld [vmem:[#allocation2 + $0x18] sm:$0xff] }
 0x457   :  { %2249 = vst [vmem:[#allocation3 + $0x80] sm:$0xf0] %v2237_v43  ;;  %2250 = vst [vmem:[#allocation3 + $0x88] sm:$0xf0] %v2238_v45 }
 0x458   :  { %v2331_v9 = vpop.permute.xlu1 %2330  ;;  %2962 = vmatprep.subr.bf16.mxu0 %v2961_v48 }
 0x459   :  { %v2329_v7 = vpop.permute.xlu0 %2328  ;;  %2964 = vmatpush1.bf16.msra.mxu0 %v2963_v24  ;;  %v2403_v28 = vld [vmem:[#allocation3 + $0x28] sm:$0xff] }
 0x45a   :  { %v2336_v17 = vsel %vm388_vm6, %v2327_v39, %v2329_v7  ;;  %v2337_v52 = vsel %vm388_vm6, %v2329_v7, %v2331_v9  ;;  %2808 = vmatprep.subr.msk.mxu0 %vm502_vm8, %v2425_v15  ;;  %v2408_v44 = vld [vmem:[#allocation3 + $0x50] sm:$0xff]  ;;  %v2736_v9 = vld [vmem:[#allocation2 + $0x20] sm:$0xff] }
 0x45b   :  { %2348 = vst [vmem:[#allocation3 + $0xb0] sm:$0xf0] %v2336_v17  ;;  %2349 = vst [vmem:[#allocation3 + $0xb8] sm:$0xf0] %v2337_v52  ;;  %v2967_v56 = vpack.c.bf16 %v2408_v44, %v2402_v2 }
 0x45c   :  { %v2377_v21 = vpop.permute.xlu1 %2376 }
 0x45d   :  { %v2375_v53 = vpop.permute.xlu0 %2374  ;;  %2809 = vmatpush1.msk.msra.mxu0 %vm502_vm8, %v2424_v50  ;;  %v2409_v23 = vld [vmem:[#allocation3 + $0x58] sm:$0xff] }
 0x45e   :  { %v2382_v46 = vsel %vm432_vm7, %v4528_v12, %v2375_v53  ;;  %v2383_v14 = vsel %vm432_vm7, %v2375_v53, %v2377_v21  ;;  %2810 = vmatmul.mubr.msk.f32.vlgmr.msra.gmra.mrb[14].mxu0 %vm495_vm9, %v4544_v35  ;;  %v2965_v22 = vpack.c.bf16 %v2409_v23, %v2403_v28  ;;  %v2415_v3 = vld [vmem:[#allocation3 + $0x88] sm:$0xff]  ;;  %v2414_v61 = vld [vmem:[#allocation3 + $0x80] sm:$0xff]  ;;  %v2741_v53 = vld [vmem:[#allocation2 + $0x58] sm:$0xff] }
 0x45f   :  { %2394 = vst [vmem:[#allocation3 + $0xe0] sm:$0xf] %v2382_v46  ;;  %2395 = vst [vmem:[#allocation3 + $0xe8] sm:$0xf] %v2383_v14  ;;  %2611 = vmatprep.mubr.f32.mxu0 %v4384_v40  ;;  %v2742_v46 = vld [vmem:[#allocation2 + $0x60] sm:$0xff] }
 0x460   :  { %2966 = vmatprep.subr.bf16.mxu0 %v2965_v22 }
 0x461   :  { %2968 = vmatpush1.bf16.msra.mxu0 %v2967_v56 }
 0x462   :  { %v2421_v12 = vld [vmem:[#allocation3 + $0xb8] sm:$0xff]  ;;  %v2420_v31 = vld [vmem:[#allocation3 + $0xb0] sm:$0xff]  ;;  %2811 = vmatmul.mubr.msk.f32.gmra.mrb[16].mxu0 %vm495_vm9, %v4557_v54 }
 0x463   :  { %v2969_v33 = vpack.c.bf16 %v2421_v12, %v2415_v3  ;;  %v2971_v11 = vpack.c.bf16 %v2420_v31, %v2414_v61  ;;  %2682 = vmatprep.mubr.f32.mxu0 %v4384_v40  ;;  %v2737_v31 = vld [vmem:[#allocation2 + $0x28] sm:$0xff] }
 0x465   :  { %2970 = vmatprep.subr.bf16.mxu0 %v2969_v33 }
 0x466   :  { %2972 = vmatpush1.bf16.msra.mxu0 %v2971_v11  ;;  %v2427_v32 = vld [vmem:[#allocation3 + $0xe8] sm:$0xf]  ;;  %v2426_v10 = vld [vmem:[#allocation3 + $0xe0] sm:$0xf] }
 0x467   :  { %2812 = vmatprep.subr.msk.mxu0 %vm502_vm8, %v2427_v32 }
 0x46a   :  { %2813 = vmatpush1.msk.msra.mxu0 %vm502_vm8, %v2426_v10 }
 0x46b   :  { %2814 = vmatmul.mubr.msk.f32.vlgmr.msra.gmra.mrb[18].mxu0 %vm495_vm9, %v4544_v35 }
 0x46c   :  { %2688 = vmatprep.mubr.f32.mxu0 %v4384_v40 }
 0x46d   :  { %v4599_v1 = vpop.permute.xlu1 %2437 }
 0x46e   :  { %v4592_v29 = vpop.permute.xlu0 %2432 }
 0x46f   :  { %2815 = vmatmul.mubr.msk.f32.gmra.mrb[20].mxu0 %vm495_vm9, %v4557_v54 }
 0x51d   :  { %v2530_v13 = vpop.f32.mrb[10].mxu0 }
 0x51e   :  { %v2531_v20 = vadd.f32 %v2530_v13, %v4592_v29  ;;  %v2532_v30 = vpop.f32.mrb[11].mxu0  ;;  %v2738_v13 = vld [vmem:[#allocation2 + $0x30] sm:$0xff] }
 0x51f   :  { %v2533_v18 = vadd.f32 %v2532_v30, %v4592_v29 }
 0x520   :  { %vm2695_vm0 = vcmp.gt.f32.partialorder %v2531_v20, 0.0  ;;  %v2709_v36 = vmul.f32 %v4594_v25, %v2531_v20 }
 0x521   :  { %vm2696_vm1 = vcmp.gt.f32.partialorder %v2533_v18, 0.0  ;;  %v2710_v40 = vmul.f32 %v4594_v25, %v2533_v18  ;;  %v2536_v35 = vpop.f32.mrb[12].mxu0 }
 0x522   :  { %v2721_v58 = vsel %vm2695_vm0, %v2531_v20, %v2709_v36  ;;  %v2537_v51 = vadd.f32 %v2536_v35, %v4599_v1  ;;  %v2538_v34 = vpop.f32.mrb[13].mxu0 }
 0x523   :  { %v2745_v6 = vadd.f32 %v2733_v27, %v2721_v58  ;;  %v2722_v37 = vsel %vm2696_vm1, %v2533_v18, %v2710_v40  ;;  %v2539_v4 = vadd.f32 %v2538_v34, %v4599_v1  ;;  %v2743_v40 = vld [vmem:[#allocation2 + $0x68] sm:$0xff]  ;;  %v2744_v27 = vld [vmem:[#allocation2 + $0x70] sm:$0xff] }
 0x524   :  { %v2746_v19 = vadd.f32 %v2734_v47, %v2722_v37  ;;  %vm2701_vm2 = vcmp.gt.f32.partialorder %v2537_v51, 0.0  ;;  %v2715_v63 = vmul.f32 %v4594_v25, %v2537_v51 }
 0x525   :  { %2757 = vst [vmem:[#allocation12] sm:$0xff] %v2745_v6  ;;  %vm2702_vm3 = vcmp.gt.f32.partialorder %v2539_v4, 0.0  ;;  %v2716_v54 = vmul.f32 %v4594_v25, %v2539_v4 }
 0x526   :  { %2758 = vst [vmem:[#allocation12 + $0x8] sm:$0xff] %v2746_v19  ;;  %v2727_v39 = vsel %vm2701_vm2, %v2537_v51, %v2715_v63 }
 0x527   :  { %v2751_v38 = vadd.f32 %v2739_v62, %v2727_v39  ;;  %v2728_v57 = vsel %vm2702_vm3, %v2539_v4, %v2716_v54 }
 0x528   :  { %v2752_v8 = vadd.f32 %v2740_v59, %v2728_v57 }
 0x529   :  { %2763 = vst [vmem:[#allocation12 + $0x30] sm:$0xff] %v2751_v38 }
 0x52a   :  { %2764 = vst [vmem:[#allocation12 + $0x38] sm:$0xff] %v2752_v8 }
 0x531   :  { %v2607_v5 = vpop.f32.mrb[14].mxu0 }
 0x532   :  { %v2608_v41 = vadd.f32 %v2607_v5, %v4592_v29  ;;  %v2609_v55 = vpop.f32.mrb[15].mxu0 }
 0x533   :  { %v2610_v49 = vadd.f32 %v2609_v55, %v4592_v29 }
 0x534   :  { %vm2697_vm4 = vcmp.gt.f32.partialorder %v2608_v41, 0.0  ;;  %v2711_v0 = vmul.f32 %v4594_v25, %v2608_v41 }
 0x535   :  { %vm2698_vm5 = vcmp.gt.f32.partialorder %v2610_v49, 0.0  ;;  %v2712_v16 = vmul.f32 %v4594_v25, %v2610_v49  ;;  %v2613_v43 = vpop.f32.mrb[16].mxu0 }
 0x536   :  { %v2723_v45 = vsel %vm2697_vm4, %v2608_v41, %v2711_v0  ;;  %v2614_v26 = vadd.f32 %v2613_v43, %v4599_v1  ;;  %v2615_v48 = vpop.f32.mrb[17].mxu0 }
 0x537   :  { %v2747_v42 = vadd.f32 %v2735_v60, %v2723_v45  ;;  %v2724_v24 = vsel %vm2698_vm5, %v2610_v49, %v2712_v16  ;;  %v2616_v7 = vadd.f32 %v2615_v48, %v4599_v1 }
 0x538   :  { %v2748_v17 = vadd.f32 %v2736_v9, %v2724_v24  ;;  %vm2703_vm6 = vcmp.gt.f32.partialorder %v2614_v26, 0.0  ;;  %v2717_v52 = vmul.f32 %v4594_v25, %v2614_v26 }
 0x539   :  { %2759 = vst [vmem:[#allocation12 + $0x10] sm:$0xff] %v2747_v42  ;;  %vm2704_vm7 = vcmp.gt.f32.partialorder %v2616_v7, 0.0  ;;  %v2718_v15 = vmul.f32 %v4594_v25, %v2616_v7 }
 0x53a   :  { %2760 = vst [vmem:[#allocation12 + $0x18] sm:$0xff] %v2748_v17  ;;  %v2729_v21 = vsel %vm2703_vm6, %v2614_v26, %v2717_v52 }
 0x53b   :  { %v2753_v50 = vadd.f32 %v2741_v53, %v2729_v21  ;;  %v2730_v44 = vsel %vm2704_vm7, %v2616_v7, %v2718_v15 }
 0x53c   :  { %v2754_v14 = vadd.f32 %v2742_v46, %v2730_v44 }
 0x53d   :  { %2765 = vst [vmem:[#allocation12 + $0x40] sm:$0xff] %v2753_v50 }
 0x53e   :  { %v2684_v28 = vpop.f32.mrb[18].mxu0  ;;  %2766 = vst [vmem:[#allocation12 + $0x48] sm:$0xff] %v2754_v14 }
 0x53f   :  { %v2685_v23 = vadd.f32 %v2684_v28, %v4592_v29  ;;  %v2686_v22 = vpop.f32.mrb[19].mxu0 }
 0x540   :  { %v2687_v2 = vadd.f32 %v2686_v22, %v4592_v29 }
 0x541   :  { %vm2699_vm8 = vcmp.gt.f32.partialorder %v2685_v23, 0.0  ;;  %v2713_v56 = vmul.f32 %v4594_v25, %v2685_v23 }
 0x542   :  { %vm2700_vm9 = vcmp.gt.f32.partialorder %v2687_v2, 0.0  ;;  %v2714_v3 = vmul.f32 %v4594_v25, %v2687_v2  ;;  %v2690_v12 = vpop.f32.mrb[20].mxu0 }
 0x543   :  { %v2725_v61 = vsel %vm2699_vm8, %v2685_v23, %v2713_v56  ;;  %v2691_v33 = vadd.f32 %v2690_v12, %v4599_v1  ;;  %v2692_v11 = vpop.f32.mrb[21].mxu0 }
 0x544   :  { %v2749_v32 = vadd.f32 %v2737_v31, %v2725_v61  ;;  %v2726_v10 = vsel %vm2700_vm9, %v2687_v2, %v2714_v3  ;;  %v2693_v20 = vadd.f32 %v2692_v11, %v4599_v1 }
 0x545   :  { %v2750_v30 = vadd.f32 %v2738_v13, %v2726_v10  ;;  %vm2705_vm11 = vcmp.gt.f32.partialorder %v2691_v33, 0.0  ;;  %v2719_v29 = vmul.f32 %v4594_v25, %v2691_v33 }
 0x546   :  { %2761 = vst [vmem:[#allocation12 + $0x20] sm:$0xff] %v2749_v32  ;;  %vm2706_vm12 = vcmp.gt.f32.partialorder %v2693_v20, 0.0  ;;  %v2720_v18 = vmul.f32 %v4594_v25, %v2693_v20 }
 0x547   :  { %2762 = vst [vmem:[#allocation12 + $0x28] sm:$0xff] %v2750_v30  ;;  %v2731_v36 = vsel %vm2705_vm11, %v2691_v33, %v2719_v29 }
 0x548   :  { %v2755_v35 = vadd.f32 %v2743_v40, %v2731_v36  ;;  %v2732_v58 = vsel %vm2706_vm12, %v2693_v20, %v2720_v18 }
 0x549   :  { %v2756_v51 = vadd.f32 %v2744_v27, %v2732_v58 }
 0x54a   :  { %2767 = vst [vmem:[#allocation12 + $0x50] sm:$0xff] %v2755_v35 }
 0x54b   :  { %2768 = vst [vmem:[#allocation12 + $0x58] sm:$0xff] %v2756_v51 }
 0x54c   :  { %3359 = shalt.err (!%p3356_p9)
}
 0x54d   :  { %s3360_s19 = scalar_lea.hbm %s4643_s9, 1536 }
 0x54e   :  { %p3361_p10 = scmp.ne.s32.totalorder %s4643_s9, %s3360_s19  ;;  %p3364_p11 = scmp.lt.u32.totalorder %s3360_s19, %s4643_s9 }
 0x550   :  { %p3366_p12 = pnand %p3364_p11, %p3361_p10 }
 0x552   :  { %3369 = shalt.err (!%p3366_p12)
}
 0x553   :  { %s3394_s22 = smov 768   ;;  %s3395_s23 = smov 48  }
 0x554   :  { %2780 = dma.vmem_to_hbm [thread:$0]  %s2775_s16, 1536, %s4643_s9, [#allocation7], %s3394_s22, %s3394_s22, %s3395_s23  }
 0x555   :  { %3376 = dma.done.wait [#allocation7], 1536  }
 0x556   :  { %3377 = vsyncadd [#allocation7], 4294965760 }
 0x557   :  { %2784 = vsyncpa [#allocation6], 1 }
 0x558   :  { %2785 = vsyncpa [#allocation11], 1 }
 0x559   :  { %2786 = vsyncpa [#allocation7], 1 }
 0x55a   :  { %2787 = vsyncpa [#allocation8], 1 }

</bundles_post_ra>
